<compile_context>
chip_gen: v5e
topology: v5e:2x2
jax: 0.10.0
libtpu: 0.0.40
codegen_flags: <defaults>
</compile_context>

<pallas_src>
import functools

import jax
import jax.numpy as jnp
from jax.experimental import pallas as pl
from jax.experimental.pallas import tpu as pltpu

F_IN = 3     # battery features: e.g. voltage, current, temperature
HID = 64     # hidden width of both Linear(..., 64) layers
F_OUT = 3    # output features
TB_DEFAULT = 1024  # batch-tile rows per grid step (multiple of 8)


def _mlp_kernel(x_ref, w1_ref, b1_ref, w2_ref, b2_ref, w3_ref, b3_ref, o_ref):
    """Whole 3-layer MLP fused into one kernel invocation per batch tile."""
    x = x_ref[...]                                                 # (tb, 3)
    h1 = jnp.dot(x, w1_ref[...], preferred_element_type=jnp.float32)
    h1 = jnp.maximum(h1 + b1_ref[...], 0.0)                        # (tb, 64)
    h2 = jnp.dot(h1, w2_ref[...], preferred_element_type=jnp.float32)
    h2 = jnp.maximum(h2 + b2_ref[...], 0.0)                        # (tb, 64)
    out = jnp.dot(h2, w3_ref[...], preferred_element_type=jnp.float32)
    o_ref[...] = (out + b3_ref[...]).astype(o_ref.dtype)           # (tb, 3)


def prepare_params(params):
    """One-time dtype/shape normalization of parameters (no padding needed)."""
    w1, b1, w2, b2, w3, b3 = params
    return (
        w1.astype(jnp.float32),                       # (3, 64)
        b1.reshape(1, HID).astype(jnp.float32),       # (1, 64)
        w2.astype(jnp.float32),                       # (64, 64)
        b2.reshape(1, HID).astype(jnp.float32),       # (1, 64)
        w3.astype(jnp.float32),                       # (64, 3)
        b3.reshape(1, F_OUT).astype(jnp.float32),     # (1, 3)
    )


@functools.partial(jax.jit, static_argnames=("tb",))
def battery_ann_forward(x, padded_params, tb=TB_DEFAULT):
    """x: (B, 3) float32 -> (B, 3) float32, matching nn.Sequential semantics."""
    w1, b1, w2, b2, w3, b3 = padded_params
    B = x.shape[0]
    grid = (pl.cdiv(B, tb),)

    return pl.pallas_call(
        _mlp_kernel,
        out_shape=jax.ShapeDtypeStruct((B, F_OUT), jnp.float32),
        grid_spec=pltpu.PrefetchScalarGridSpec(
            num_scalar_prefetch=0,
            grid=grid,
            in_specs=[
                pl.BlockSpec((tb, F_IN), lambda i: (i, 0)),      # x tile
                pl.BlockSpec((F_IN, HID), lambda i: (0, 0)),     # W1 (resident)
                pl.BlockSpec((1, HID), lambda i: (0, 0)),        # b1
                pl.BlockSpec((HID, HID), lambda i: (0, 0)),      # W2
                pl.BlockSpec((1, HID), lambda i: (0, 0)),        # b2
                pl.BlockSpec((HID, F_OUT), lambda i: (0, 0)),    # W3
                pl.BlockSpec((1, F_OUT), lambda i: (0, 0)),      # b3
            ],
            out_specs=pl.BlockSpec((tb, F_OUT), lambda i: (i, 0)),
        ),
        compiler_params=pltpu.CompilerParams(
            dimension_semantics=("parallel",)),
    )(x.astype(jnp.float32), w1, b1, w2, b2, w3, b3)


def init_params(key):
    """Deterministic init mimicking torch.nn.Linear default (U[-1/sqrt(fan_in), +])."""
    ks = jax.random.split(key, 6)

    def linear(kw, kb, fan_in, fan_out):
        bound = 1.0 / jnp.sqrt(jnp.float32(fan_in))
        w = jax.random.uniform(kw, (fan_in, fan_out), jnp.float32, -bound, bound)
        b = jax.random.uniform(kb, (fan_out,), jnp.float32, -bound, bound)
        return w, b

    w1, b1 = linear(ks[0], ks[1], F_IN, HID)
    w2, b2 = linear(ks[2], ks[3], HID, HID)
    w3, b3 = linear(ks[4], ks[5], HID, F_OUT)
    return (w1, b1, w2, b2, w3, b3)


def _reference(x, params):
    w1, b1, w2, b2, w3, b3 = params
    h1 = jnp.maximum(x @ w1 + b1, 0.0)
    h2 = jnp.maximum(h1 @ w2 + b2, 0.0)
    return h2 @ w3 + b3


if __name__ == "__main__":
    key = jax.random.PRNGKey(0)
    k_x, k_x2, k_p = jax.random.split(key, 3)
    params = init_params(k_p)
    padded_params = prepare_params(params)   # normalize once, outside the hot loop

    # Small example batch of (voltage, current, temperature)-like features.
    x = jax.random.normal(k_x, (2, F_IN), jnp.float32)
    out = jax.block_until_ready(battery_ann_forward(x, padded_params))
    ref = _reference(x, params)
    assert out.shape == (2, F_OUT)
    assert jnp.allclose(out, ref, atol=1e-5, rtol=1e-5)

    # Larger batch exercises the multi-step grid and the masked edge block
    # (grid = cdiv(2500, 1024) = 3, last block partial).
    x_big = jax.random.normal(k_x2, (2500, F_IN), jnp.float32)
    out_big = jax.block_until_ready(battery_ann_forward(x_big, padded_params))
    ref_big = _reference(x_big, params)
    assert out_big.shape == (2500, F_OUT)
    assert jnp.allclose(out_big, ref_big, atol=1e-5, rtol=1e-5)

    print("KERNEL_OK")
</pallas_src>

<mosaic_0001>
module attributes {stable_mosaic.version = 11 : i64} {
  func.func @_mlp_kernel(%arg0: i32, %arg1: memref<1024x3xf32, #tpu.memory_space<vmem>>, %arg2: memref<3x64xf32, #tpu.memory_space<vmem>>, %arg3: memref<1x64xf32, #tpu.memory_space<vmem>>, %arg4: memref<64x64xf32, #tpu.memory_space<vmem>>, %arg5: memref<1x64xf32, #tpu.memory_space<vmem>>, %arg6: memref<64x3xf32, #tpu.memory_space<vmem>>, %arg7: memref<1x3xf32, #tpu.memory_space<vmem>>, %arg8: memref<1024x3xf32, #tpu.memory_space<vmem>>) attributes {dimension_semantics = [#tpu.dimension_semantics<parallel>], iteration_bounds = array<i64: 1>, scalar_prefetch = 0 : i64, scratch_operands = 0 : i64, tpu.core_type = #tpu.core_type<tc>, window_params = [{transform_indices = @transform_0, window_bounds = array<i64: 1024, 3>}, {pipeline_mode = #tpu.pipeline_mode<synchronous>, transform_indices = @transform_1, window_bounds = array<i64: 3, 64>}, {pipeline_mode = #tpu.pipeline_mode<synchronous>, transform_indices = @transform_2, window_bounds = array<i64: 1, 64>}, {pipeline_mode = #tpu.pipeline_mode<synchronous>, transform_indices = @transform_3, window_bounds = array<i64: 64, 64>}, {pipeline_mode = #tpu.pipeline_mode<synchronous>, transform_indices = @transform_4, window_bounds = array<i64: 1, 64>}, {pipeline_mode = #tpu.pipeline_mode<synchronous>, transform_indices = @transform_5, window_bounds = array<i64: 64, 3>}, {pipeline_mode = #tpu.pipeline_mode<synchronous>, transform_indices = @transform_6, window_bounds = array<i64: 1, 3>}, {transform_indices = @transform_7, window_bounds = array<i64: 1024, 3>}]} {
    %c0 = arith.constant 0 : index
    %c0_0 = arith.constant 0 : index
    %0 = vector.load %arg1[%c0, %c0_0] : memref<1024x3xf32, #tpu.memory_space<vmem>>, vector<1024x3xf32>
    %c0_1 = arith.constant 0 : index
    %c0_2 = arith.constant 0 : index
    %1 = vector.load %arg2[%c0_1, %c0_2] : memref<3x64xf32, #tpu.memory_space<vmem>>, vector<3x64xf32>
    %cst = arith.constant dense<0.000000e+00> : vector<1024x64xf32>
    %2 = tpu.matmul %0, %1, %cst {dimension_numbers = #tpu.dot_dimension_numbers<[1], [0], [0], [1], [0, 0, 1, 1], [], []>} : vector<1024x3xf32>, vector<3x64xf32>, vector<1024x64xf32> -> vector<1024x64xf32>
    %c0_3 = arith.constant 0 : index
    %c0_4 = arith.constant 0 : index
    %3 = vector.load %arg3[%c0_3, %c0_4] : memref<1x64xf32, #tpu.memory_space<vmem>>, vector<1x64xf32>
    %4 = vector.broadcast %3 : vector<1x64xf32> to vector<1024x64xf32>
    %5 = arith.addf %2, %4 : vector<1024x64xf32>
    %cst_5 = arith.constant 0.000000e+00 : f32
    %6 = vector.broadcast %cst_5 : f32 to vector<1024x64xf32>
    %7 = arith.maximumf %5, %6 : vector<1024x64xf32>
    %c0_6 = arith.constant 0 : index
    %c0_7 = arith.constant 0 : index
    %8 = vector.load %arg4[%c0_6, %c0_7] : memref<64x64xf32, #tpu.memory_space<vmem>>, vector<64x64xf32>
    %cst_8 = arith.constant dense<0.000000e+00> : vector<1024x64xf32>
    %9 = tpu.matmul %7, %8, %cst_8 {dimension_numbers = #tpu.dot_dimension_numbers<[1], [0], [0], [1], [0, 0, 1, 1], [], []>} : vector<1024x64xf32>, vector<64x64xf32>, vector<1024x64xf32> -> vector<1024x64xf32>
    %c0_9 = arith.constant 0 : index
    %c0_10 = arith.constant 0 : index
    %10 = vector.load %arg5[%c0_9, %c0_10] : memref<1x64xf32, #tpu.memory_space<vmem>>, vector<1x64xf32>
    %11 = vector.broadcast %10 : vector<1x64xf32> to vector<1024x64xf32>
    %12 = arith.addf %9, %11 : vector<1024x64xf32>
    %cst_11 = arith.constant 0.000000e+00 : f32
    %13 = vector.broadcast %cst_11 : f32 to vector<1024x64xf32>
    %14 = arith.maximumf %12, %13 : vector<1024x64xf32>
    %c0_12 = arith.constant 0 : index
    %c0_13 = arith.constant 0 : index
    %15 = vector.load %arg6[%c0_12, %c0_13] : memref<64x3xf32, #tpu.memory_space<vmem>>, vector<64x3xf32>
    %cst_14 = arith.constant dense<0.000000e+00> : vector<1024x3xf32>
    %16 = tpu.matmul %14, %15, %cst_14 {dimension_numbers = #tpu.dot_dimension_numbers<[1], [0], [0], [1], [0, 0, 1, 1], [], []>} : vector<1024x64xf32>, vector<64x3xf32>, vector<1024x3xf32> -> vector<1024x3xf32>
    %c0_15 = arith.constant 0 : index
    %c0_16 = arith.constant 0 : index
    %17 = vector.load %arg7[%c0_15, %c0_16] : memref<1x3xf32, #tpu.memory_space<vmem>>, vector<1x3xf32>
    %18 = vector.broadcast %17 : vector<1x3xf32> to vector<1024x3xf32>
    %19 = arith.addf %16, %18 : vector<1024x3xf32>
    %c0_17 = arith.constant 0 : index
    %c0_18 = arith.constant 0 : index
    %20 = vector.load %arg8[%c0_17, %c0_18] : memref<1024x3xf32, #tpu.memory_space<vmem>>, vector<1024x3xf32>
    tpu.vector_store %arg8[%c0_17, %c0_18], %19 {strides = array<i32>} : memref<1024x3xf32, #tpu.memory_space<vmem>>, vector<1024x3xf32>,
    return
  }
  func.func @transform_0(%arg0: i32) -> (i32, i32) {
    %c0_i32 = arith.constant 0 : i32
    %c0_i32_0 = arith.constant 0 : i32
    return %arg0, %c0_i32 : i32, i32
  }
  func.func @transform_1(%arg0: i32) -> (i32, i32) {
    %c0_i32 = arith.constant 0 : i32
    %c0_i32_0 = arith.constant 0 : i32
    %c0_i32_1 = arith.constant 0 : i32
    return %c0_i32, %c0_i32_0 : i32, i32
  }
  func.func @transform_2(%arg0: i32) -> (i32, i32) {
    %c0_i32 = arith.constant 0 : i32
    %c0_i32_0 = arith.constant 0 : i32
    %c0_i32_1 = arith.constant 0 : i32
    return %c0_i32, %c0_i32_0 : i32, i32
  }
  func.func @transform_3(%arg0: i32) -> (i32, i32) {
    %c0_i32 = arith.constant 0 : i32
    %c0_i32_0 = arith.constant 0 : i32
    %c0_i32_1 = arith.constant 0 : i32
    return %c0_i32, %c0_i32_0 : i32, i32
  }
  func.func @transform_4(%arg0: i32) -> (i32, i32) {
    %c0_i32 = arith.constant 0 : i32
    %c0_i32_0 = arith.constant 0 : i32
    %c0_i32_1 = arith.constant 0 : i32
    return %c0_i32, %c0_i32_0 : i32, i32
  }
  func.func @transform_5(%arg0: i32) -> (i32, i32) {
    %c0_i32 = arith.constant 0 : i32
    %c0_i32_0 = arith.constant 0 : i32
    %c0_i32_1 = arith.constant 0 : i32
    return %c0_i32, %c0_i32_0 : i32, i32
  }
  func.func @transform_6(%arg0: i32) -> (i32, i32) {
    %c0_i32 = arith.constant 0 : i32
    %c0_i32_0 = arith.constant 0 : i32
    %c0_i32_1 = arith.constant 0 : i32
    return %c0_i32, %c0_i32_0 : i32, i32
  }
  func.func @transform_7(%arg0: i32) -> (i32, i32) {
    %c0_i32 = arith.constant 0 : i32
    %c0_i32_0 = arith.constant 0 : i32
    return %arg0, %c0_i32 : i32, i32
  }
}

</mosaic_0001>

<bundles_post_ra>
// kernel: battery_ann_forward.1
= control target key start
LH: loop header
LB: loop body
LE: loop exit
PB: predicated region body
PF: predicated region fallthrough
CT: control target
= control target key end

     0   :  { %12 = vsyncpa [#allocation3], 0  ;;  %s4758_s0 = inlined_call_operand.hbm [shape: f32[2,3], index: 0, kind: input, shape index: {}]   ;;  %s4759_s1 = inlined_call_operand.vmem [shape: f32[3,64], index: 1, kind: input, shape index: {}]   ;;  %s4760_s2 = inlined_call_operand.hbm [shape: f32[1,64], index: 2, kind: input, shape index: {}]   ;;  %s4761_s3 = inlined_call_operand.vmem [shape: f32[64,64], index: 3, kind: input, shape index: {}]   ;;  %s4762_s4 = inlined_call_operand.hbm [shape: f32[1,64], index: 4, kind: input, shape index: {}]   ;;  %s4763_s5 = inlined_call_operand.vmem [shape: f32[64,3], index: 5, kind: input, shape index: {}]   ;;  %s4764_s6 = inlined_call_operand.vmem [shape: f32[1,3], index: 6, kind: input, shape index: {}]   ;;  %s4765_s7 = inlined_call_operand.hbm [shape: f32[2,3], index: 7, kind: output, shape index: {}]  }
   0x1   :  { %13 = vsyncpa [#allocation6], 0 }
   0x2   :  { %14 = vsyncpa [#allocation4], 0  ;;  %s35_s26 = sshll.u32 %s4760_s2, 4  ;;  %s36_s26 = int_to_ptr.hbm [resolvable:$true] %s35_s26 }
   0x3   :  { %18 = vsyncadd [#allocation3], 16352  ;;  %s3519_s27 = smov [#allocation5]   ;;  %s19_s8 = sshll.u32 %s4758_s0, 4  ;;  %s20_s8 = int_to_ptr.hbm [resolvable:$true] %s19_s8 }
   0x4   :  { %s37_s28 = sshll.u32 %s3519_s27, 4  ;;  %s3520_s9 = smov [#allocation2]   ;;  %s38_s28 = int_to_ptr.vmem [resolvable:$true] %s37_s28 }
   0x5   :  { %40 = dma.hbm_to_vmem [thread:$0]  %s36_s26, 16, %s38_s28, [#allocation6]  }
   0x6   :  { %s21_s10 = sshll.u32 %s3520_s9, 4  ;;  %s3521_s11 = smov 32   ;;  %s22_s10 = int_to_ptr.vmem [resolvable:$true] %s21_s10 }
   0x7   :  { %s3522_s12 = smov 2   ;;  %s48_s14 = sshll.u32 %s4762_s4, 4  ;;  %s49_s14 = int_to_ptr.hbm [resolvable:$true] %s48_s14 }
   0x8   :  { %27 = dma.hbm_to_vmem [thread:$0]  %s20_s8, 32, %s22_s10, [#allocation3], %s3521_s11, %s3521_s11, %s3522_s12  }
   0x9   :  { %s3523_s15 = smov [#allocation7]  }
   0xa   :  { %s50_s16 = sshll.u32 %s3523_s15, 4  ;;  %s51_s16 = int_to_ptr.vmem [resolvable:$true] %s50_s16 }
   0xb   :  { %53 = dma.hbm_to_vmem [thread:$0]  %s49_s14, 16, %s51_s16, [#allocation6]  }
   0xc   :  { %3513 = dma.done.wait [#allocation3], 16384  }
   0xd   :  { %3514 = vsyncadd [#allocation3], 4294950912 }
   0xe   :  { %3515 = dma.done.wait [#allocation6], 32  }
   0xf   :  { %3516 = vsyncadd [#allocation6], 4294967264  ;;  %vm588_vm0 = vcmask 1042432   ;;  %vm203_vm1 = vcmask 23552   ;;  %v198_v0 = vld [vmem:[%s4759_s1] sm:$0x7] }
  0x10   :  { %v70_v1 = vld [vmem:[#allocation2] sm:$0xff]  ;;  %2992 = vmatpush.msk.msra.mxu0 %vm588_vm0, %v198_v0  ;;  %3377 = vmatpush.msk.msra.mxu3 %vm588_vm0, %v198_v0  ;;  %v71_v2 = vld [vmem:[#allocation2 + $0x8] sm:$0xff]  ;;  %v72_v3 = vld [vmem:[#allocation2 + $0x10] sm:$0xff]  ;;  %vm1133_vm2 = vcmask 523264  }
  0x11   :  { %2993 = vmatmul.msk.f32.vlgmr.msra.gmra.mxu0 %vm203_vm1, %v70_v1  ;;  %v73_v4 = vld [vmem:[#allocation2 + $0x18] sm:$0xff]  ;;  %v74_v5 = vld [vmem:[#allocation2 + $0x20] sm:$0xff]  ;;  %v75_v6 = vld [vmem:[#allocation2 + $0x28] sm:$0xff] }
  0x12   :  { %v76_v7 = vld [vmem:[#allocation2 + $0x30] sm:$0xff]  ;;  %v77_v8 = vld [vmem:[#allocation2 + $0x38] sm:$0xff]  ;;  %v78_v9 = vld [vmem:[#allocation2 + $0x40] sm:$0xff] }
  0x13   :  { %v79_v10 = vld [vmem:[#allocation2 + $0x48] sm:$0xff]  ;;  %v80_v11 = vld [vmem:[#allocation2 + $0x50] sm:$0xff]  ;;  %v1128_v12 = vld [vmem:[%s4761_s3 + $0x38] sm:$0xff] }
  0x14   :  { %v1127_v13 = vld [vmem:[%s4761_s3 + $0x30] sm:$0xff]  ;;  %1526 = vmatpush.msra.mxu1 %v1128_v12  ;;  %3378 = vmatpush.msrb.mxu3 %v1128_v12  ;;  %v1126_v14 = vld [vmem:[%s4761_s3 + $0x28] sm:$0xff]  ;;  %v81_v15 = vld [vmem:[#allocation2 + $0x58] sm:$0xff] }
  0x15   :  { %v1125_v16 = vld [vmem:[%s4761_s3 + $0x20] sm:$0xff]  ;;  %v1124_v17 = vld [vmem:[%s4761_s3 + $0x18] sm:$0xff]  ;;  %v1123_v18 = vld [vmem:[%s4761_s3 + $0x10] sm:$0xff] }
  0x16   :  { %1527 = vmatpush.msra.mxu1 %v1127_v13  ;;  %3379 = vmatpush.msrb.mxu3 %v1127_v13  ;;  %v82_v19 = vld [vmem:[#allocation2 + $0x60] sm:$0xff]  ;;  %v1122_v20 = vld [vmem:[%s4761_s3 + $0x8] sm:$0xff]  ;;  %v84_v23 = vld [vmem:[#allocation2 + $0x70] sm:$0xff] }
  0x17   :  { %v1121_v21 = vld [vmem:[%s4761_s3] sm:$0xff]  ;;  %v83_v22 = vld [vmem:[#allocation2 + $0x68] sm:$0xff]  ;;  %v85_v24 = vld [vmem:[#allocation2 + $0x78] sm:$0xff] }
  0x18   :  { %1528 = vmatpush.msra.mxu1 %v1126_v14  ;;  %3380 = vmatpush.msrb.mxu3 %v1126_v14  ;;  %v3620_v25 = vld [vmem:[#allocation5] ss:$0 sm:$0xff]  ;;  %v87_v31 = vld [vmem:[#allocation2 + $0x88] sm:$0xff]  ;;  %v88_v35 = vld [vmem:[#allocation2 + $0x90] sm:$0xff] }
  0x19   :  { %2994 = vmatmul.msk.f32.gmra.mxu0 %vm203_vm1, %v71_v2  ;;  %v86_v27 = vld [vmem:[#allocation2 + $0x80] sm:$0xff]  ;;  %v89_v39 = vld [vmem:[#allocation2 + $0x98] sm:$0xff]  ;;  %v91_v47 = vld [vmem:[#allocation2 + $0xa8] sm:$0xff] }
  0x1a   :  { %1529 = vmatpush.msra.mxu1 %v1125_v16  ;;  %3381 = vmatpush.msrb.mxu3 %v1125_v16  ;;  %v90_v43 = vld [vmem:[#allocation2 + $0xa0] sm:$0xff]  ;;  %v92_v51 = vld [vmem:[#allocation2 + $0xb0] sm:$0xff]  ;;  %v93_v55 = vld [vmem:[#allocation2 + $0xb8] sm:$0xff] }
  0x1b   :  { %v94_v59 = vld [vmem:[#allocation2 + $0xc0] sm:$0xff]  ;;  %v95_v63 = vld [vmem:[#allocation2 + $0xc8] sm:$0xff]  ;;  %v2050_v14 = vld [vmem:[%s4763_s5 + $0x18] sm:$0xff] }
  0x1c   :  { %1530 = vmatpush.msra.mxu1 %v1124_v17  ;;  %3382 = vmatpush.msrb.mxu3 %v1124_v17  ;;  %v2052_v12 = vld [vmem:[%s4763_s5 + $0x28] sm:$0xff]  ;;  %v2051_v13 = vld [vmem:[%s4763_s5 + $0x20] sm:$0xff] }
  0x1d   :  { %v98_v16 = vld [vmem:[#allocation2 + $0xe0] sm:$0xff] }
  0x1e   :  { %1531 = vmatpush.msra.mxu1 %v1123_v18  ;;  %3383 = vmatpush.msrb.mxu3 %v1123_v18  ;;  %v2049_v18 = vld [vmem:[%s4763_s5 + $0x10] sm:$0xff] }
  0x20   :  { %1532 = vmatpush.msra.mxu1 %v1122_v20  ;;  %3384 = vmatpush.msrb.mxu3 %v1122_v20  ;;  %v2048_v20 = vld [vmem:[%s4763_s5 + $0x8] sm:$0xff] }
  0x21   :  { %2995 = vmatmul.msk.f32.gmra.mxu0 %vm203_vm1, %v72_v3  ;;  %v96_v3 = vld [vmem:[#allocation2 + $0xd0] sm:$0xff] }
  0x22   :  { %1533 = vmatpush.msra.mxu1 %v1121_v21  ;;  %3385 = vmatpush.msrb.mxu3 %v1121_v21  ;;  %v2047_v21 = vld [vmem:[%s4763_s5] sm:$0xff] }
  0x29   :  { %2996 = vmatmul.msk.f32.gmra.mxu0 %vm203_vm1, %v73_v4 }
  0x31   :  { %2997 = vmatmul.msk.f32.gmra.mxu0 %vm203_vm1, %v74_v5 }
  0x39   :  { %2998 = vmatmul.msk.f32.gmra.mxu0 %vm203_vm1, %v75_v6  ;;  %v2054_v6 = vld [vmem:[%s4763_s5 + $0x38] sm:$0xff] }
  0x3a   :  { %2451 = vmatpush.msra.mxu2 %v2054_v6 }
  0x41   :  { %2999 = vmatmul.msk.f32.gmra.mxu0 %vm203_vm1, %v76_v7 }
  0x49   :  { %3000 = vmatmul.msk.f32.gmra.mxu0 %vm203_vm1, %v77_v8  ;;  %v97_v8 = vld [vmem:[#allocation2 + $0xd8] sm:$0xff] }
  0x51   :  { %3001 = vmatmul.msk.f32.gmra.mxu0 %vm203_vm1, %v78_v9 }
  0x59   :  { %3002 = vmatmul.msk.f32.gmra.mxu0 %vm203_vm1, %v79_v10  ;;  %v2053_v10 = vld [vmem:[%s4763_s5 + $0x30] sm:$0xff] }
  0x5a   :  { %2452 = vmatpush.msra.mxu2 %v2053_v10 }
  0x5c   :  { %2453 = vmatpush.msra.mxu2 %v2052_v12 }
  0x5e   :  { %2454 = vmatpush.msra.mxu2 %v2051_v13 }
  0x60   :  { %2455 = vmatpush.msra.mxu2 %v2050_v14 }
  0x61   :  { %3003 = vmatmul.msk.f32.gmra.mxu0 %vm203_vm1, %v80_v11 }
  0x62   :  { %2456 = vmatpush.msra.mxu2 %v2049_v18 }
  0x64   :  { %2457 = vmatpush.msra.mxu2 %v2048_v20 }
  0x66   :  { %2458 = vmatpush.msra.mxu2 %v2047_v21 }
  0x69   :  { %3004 = vmatmul.msk.f32.gmra.mxu0 %vm203_vm1, %v81_v15 }
  0x71   :  { %3005 = vmatmul.msk.f32.gmra.mxu0 %vm203_vm1, %v82_v19 }
  0x79   :  { %3006 = vmatmul.msk.f32.gmra.mxu0 %vm203_vm1, %v83_v22 }
  0x81   :  { %3007 = vmatmul.msk.f32.gmra.mxu0 %vm203_vm1, %v84_v23  ;;  %v99_v23 = vld [vmem:[#allocation2 + $0xe8] sm:$0xff] }
  0x89   :  { %3008 = vmatmul.msk.f32.gmra.mxu0 %vm203_vm1, %v85_v24 }
  0x8e   :  { %v609_v26 = vpop.f32.mrf.mxu0 }
  0x8f   :  { %v610_v28 = vadd.f32 %v3620_v25, %v609_v26 }
  0x91   :  { %v993_v29 = vmax.f32 %v610_v28, 0.0  ;;  %3009 = vmatmul.msk.f32.gmra.mxu0 %vm203_vm1, %v86_v27  ;;  %v100_v28 = vld [vmem:[#allocation2 + $0xf0] sm:$0xff] }
  0x93   :  { %3121 = vmatmul.msk.f32.vlgmr.msra.gmra.mxu1 %vm1133_vm2, %v993_v29 }
  0x96   :  { %v612_v30 = vpop.f32.mrf.mxu0 }
  0x97   :  { %v613_v32 = vadd.f32 %v3620_v25, %v612_v30 }
  0x99   :  { %v994_v33 = vmax.f32 %v613_v32, 0.0  ;;  %3010 = vmatmul.msk.f32.gmra.mxu0 %vm203_vm1, %v87_v31  ;;  %v101_v32 = vld [vmem:[#allocation2 + $0xf8] sm:$0xff] }
  0x9b   :  { %3122 = vmatmul.msk.f32.gmra.mxu1 %vm1133_vm2, %v994_v33 }
  0x9e   :  { %v615_v34 = vpop.f32.mrf.mxu0 }
  0x9f   :  { %v616_v36 = vadd.f32 %v3620_v25, %v615_v34 }
  0xa1   :  { %v995_v37 = vmax.f32 %v616_v36, 0.0  ;;  %3011 = vmatmul.msk.f32.gmra.mxu0 %vm203_vm1, %v88_v35  ;;  %v3694_v35 = vld [vmem:[#allocation7] ss:$0 sm:$0xff] }
  0xa3   :  { %3123 = vmatmul.msk.f32.gmra.mxu1 %vm1133_vm2, %v995_v37  ;;  %v102_v37 = vld [vmem:[#allocation2 + $0x100] sm:$0xff] }
  0xa6   :  { %v618_v38 = vpop.f32.mrf.mxu0 }
  0xa7   :  { %v619_v40 = vadd.f32 %v3620_v25, %v618_v38 }
  0xa9   :  { %v996_v41 = vmax.f32 %v619_v40, 0.0  ;;  %3012 = vmatmul.msk.f32.gmra.mxu0 %vm203_vm1, %v89_v39 }
  0xab   :  { %3124 = vmatmul.msk.f32.gmra.mxu1 %vm1133_vm2, %v996_v41 }
  0xae   :  { %v621_v42 = vpop.f32.mrf.mxu0 }
  0xaf   :  { %v622_v44 = vadd.f32 %v3620_v25, %v621_v42 }
  0xb1   :  { %v997_v45 = vmax.f32 %v622_v44, 0.0  ;;  %3013 = vmatmul.msk.f32.gmra.mxu0 %vm203_vm1, %v90_v43  ;;  %v103_v44 = vld [vmem:[#allocation2 + $0x108] sm:$0xff] }
  0xb3   :  { %3125 = vmatmul.msk.f32.gmra.mxu1 %vm1133_vm2, %v997_v45 }
  0xb6   :  { %v624_v46 = vpop.f32.mrf.mxu0 }
  0xb7   :  { %v625_v48 = vadd.f32 %v3620_v25, %v624_v46 }
  0xb9   :  { %v998_v49 = vmax.f32 %v625_v48, 0.0  ;;  %3014 = vmatmul.msk.f32.gmra.mxu0 %vm203_vm1, %v91_v47 }
  0xbb   :  { %3126 = vmatmul.msk.f32.gmra.mxu1 %vm1133_vm2, %v998_v49 }
  0xbe   :  { %v627_v50 = vpop.f32.mrf.mxu0 }
  0xbf   :  { %v628_v52 = vadd.f32 %v3620_v25, %v627_v50 }
  0xc1   :  { %v999_v53 = vmax.f32 %v628_v52, 0.0  ;;  %3015 = vmatmul.msk.f32.gmra.mxu0 %vm203_vm1, %v92_v51  ;;  %v104_v51 = vld [vmem:[#allocation2 + $0x110] sm:$0xff] }
  0xc3   :  { %3127 = vmatmul.msk.f32.gmra.mxu1 %vm1133_vm2, %v999_v53 }
  0xc6   :  { %v630_v54 = vpop.f32.mrf.mxu0 }
  0xc7   :  { %v631_v56 = vadd.f32 %v3620_v25, %v630_v54 }
  0xc9   :  { %v1000_v57 = vmax.f32 %v631_v56, 0.0  ;;  %3016 = vmatmul.msk.f32.gmra.mxu0 %vm203_vm1, %v93_v55 }
  0xcb   :  { %3128 = vmatmul.msk.f32.gmra.mxu1 %vm1133_vm2, %v1000_v57 }
  0xce   :  { %v633_v58 = vpop.f32.mrf.mxu0 }
  0xcf   :  { %v634_v60 = vadd.f32 %v3620_v25, %v633_v58  ;;  %v105_v58 = vld [vmem:[#allocation2 + $0x118] sm:$0xff] }
  0xd1   :  { %v1001_v61 = vmax.f32 %v634_v60, 0.0  ;;  %3017 = vmatmul.msk.f32.gmra.mxu0 %vm203_vm1, %v94_v59 }
  0xd3   :  { %3129 = vmatmul.msk.f32.gmra.mxu1 %vm1133_vm2, %v1001_v61 }
  0xd6   :  { %v636_v62 = vpop.f32.mrf.mxu0 }
  0xd7   :  { %v637_v0 = vadd.f32 %v3620_v25, %v636_v62 }
  0xd9   :  { %v1002_v1 = vmax.f32 %v637_v0, 0.0  ;;  %3018 = vmatmul.msk.f32.gmra.mxu0 %vm203_vm1, %v95_v63 }
  0xdb   :  { %3130 = vmatmul.msk.f32.gmra.mxu1 %vm1133_vm2, %v1002_v1  ;;  %v106_v1 = vld [vmem:[#allocation2 + $0x120] sm:$0xff] }
  0xde   :  { %v639_v2 = vpop.f32.mrf.mxu0 }
  0xdf   :  { %v640_v4 = vadd.f32 %v3620_v25, %v639_v2 }
  0xe1   :  { %v1003_v5 = vmax.f32 %v640_v4, 0.0  ;;  %3019 = vmatmul.msk.f32.gmra.mxu0 %vm203_vm1, %v96_v3 }
  0xe3   :  { %3131 = vmatmul.msk.f32.gmra.mxu1 %vm1133_vm2, %v1003_v5 }
  0xe6   :  { %v642_v7 = vpop.f32.mrf.mxu0 }
  0xe7   :  { %v643_v9 = vadd.f32 %v3620_v25, %v642_v7 }
  0xe9   :  { %v1004_v11 = vmax.f32 %v643_v9, 0.0  ;;  %3020 = vmatmul.msk.f32.gmra.mxu0 %vm203_vm1, %v97_v8  ;;  %v107_v8 = vld [vmem:[#allocation2 + $0x128] sm:$0xff] }
  0xeb   :  { %3132 = vmatmul.msk.f32.gmra.mxu1 %vm1133_vm2, %v1004_v11 }
  0xee   :  { %v645_v15 = vpop.f32.mrf.mxu0 }
  0xef   :  { %v646_v17 = vadd.f32 %v3620_v25, %v645_v15  ;;  %v108_v15 = vld [vmem:[#allocation2 + $0x130] sm:$0xff] }
  0xf1   :  { %v1005_v19 = vmax.f32 %v646_v17, 0.0  ;;  %3021 = vmatmul.msk.f32.gmra.mxu0 %vm203_vm1, %v98_v16 }
  0xf3   :  { %3133 = vmatmul.msk.f32.gmra.mxu1 %vm1133_vm2, %v1005_v19 }
  0xf6   :  { %v648_v22 = vpop.f32.mrf.mxu0 }
  0xf7   :  { %v649_v24 = vadd.f32 %v3620_v25, %v648_v22  ;;  %v109_v22 = vld [vmem:[#allocation2 + $0x138] sm:$0xff] }
  0xf9   :  { %v1006_v26 = vmax.f32 %v649_v24, 0.0  ;;  %3022 = vmatmul.msk.f32.gmra.mxu0 %vm203_vm1, %v99_v23 }
  0xfb   :  { %3134 = vmatmul.msk.f32.gmra.mxu1 %vm1133_vm2, %v1006_v26 }
  0xfe   :  { %v651_v27 = vpop.f32.mrf.mxu0 }
  0xff   :  { %v652_v29 = vadd.f32 %v3620_v25, %v651_v27 }
 0x101   :  { %v1007_v30 = vmax.f32 %v652_v29, 0.0  ;;  %3023 = vmatmul.msk.f32.gmra.mxu0 %vm203_vm1, %v100_v28 }
 0x103   :  { %3135 = vmatmul.msk.f32.gmra.mxu1 %vm1133_vm2, %v1007_v30  ;;  %v110_v30 = vld [vmem:[#allocation2 + $0x140] sm:$0xff] }
 0x106   :  { %v654_v31 = vpop.f32.mrf.mxu0 }
 0x107   :  { %v655_v33 = vadd.f32 %v3620_v25, %v654_v31 }
 0x109   :  { %v1008_v34 = vmax.f32 %v655_v33, 0.0  ;;  %3024 = vmatmul.msk.f32.gmra.mxu0 %vm203_vm1, %v101_v32 }
 0x10b   :  { %3136 = vmatmul.msk.f32.gmra.mxu1 %vm1133_vm2, %v1008_v34 }
 0x10e   :  { %v657_v36 = vpop.f32.mrf.mxu0 }
 0x10f   :  { %v658_v38 = vadd.f32 %v3620_v25, %v657_v36 }
 0x110   :  { %v1535_v39 = vpop.f32.mrf.mxu1 }
 0x111   :  { %v1009_v40 = vmax.f32 %v658_v38, 0.0  ;;  %v1536_v41 = vadd.f32 %v3694_v35, %v1535_v39  ;;  %3025 = vmatmul.msk.f32.gmra.mxu0 %vm203_vm1, %v102_v37  ;;  %v111_v38 = vld [vmem:[#allocation2 + $0x148] sm:$0xff] }
 0x113   :  { %v1919_v42 = vmax.f32 %v1536_v41, 0.0  ;;  %3137 = vmatmul.msk.f32.gmra.mxu1 %vm1133_vm2, %v1009_v40 }
 0x115   :  { %3249 = vmatmul.msk.f32.vlgmr.msra.gmra.mxu2 %vm1133_vm2, %v1919_v42 }
 0x116   :  { %v660_v43 = vpop.f32.mrf.mxu0 }
 0x117   :  { %v661_v45 = vadd.f32 %v3620_v25, %v660_v43 }
 0x118   :  { %v1538_v46 = vpop.f32.mrf.mxu1 }
 0x119   :  { %v1010_v47 = vmax.f32 %v661_v45, 0.0  ;;  %v1539_v48 = vadd.f32 %v3694_v35, %v1538_v46  ;;  %3026 = vmatmul.msk.f32.gmra.mxu0 %vm203_vm1, %v103_v44  ;;  %v112_v45 = vld [vmem:[#allocation2 + $0x150] sm:$0xff] }
 0x11b   :  { %v1920_v49 = vmax.f32 %v1539_v48, 0.0  ;;  %3138 = vmatmul.msk.f32.gmra.mxu1 %vm1133_vm2, %v1010_v47 }
 0x11d   :  { %3250 = vmatmul.msk.f32.gmra.mxu2 %vm1133_vm2, %v1920_v49 }
 0x11e   :  { %v663_v50 = vpop.f32.mrf.mxu0 }
 0x11f   :  { %v664_v52 = vadd.f32 %v3620_v25, %v663_v50 }
 0x120   :  { %v1541_v53 = vpop.f32.mrf.mxu1 }
 0x121   :  { %v1011_v54 = vmax.f32 %v664_v52, 0.0  ;;  %v1542_v55 = vadd.f32 %v3694_v35, %v1541_v53  ;;  %3027 = vmatmul.msk.f32.gmra.mxu0 %vm203_vm1, %v104_v51  ;;  %v113_v52 = vld [vmem:[#allocation2 + $0x158] sm:$0xff] }
 0x123   :  { %v1921_v56 = vmax.f32 %v1542_v55, 0.0  ;;  %3139 = vmatmul.msk.f32.gmra.mxu1 %vm1133_vm2, %v1011_v54 }
 0x125   :  { %3251 = vmatmul.msk.f32.gmra.mxu2 %vm1133_vm2, %v1921_v56 }
 0x126   :  { %v666_v57 = vpop.f32.mrf.mxu0 }
 0x127   :  { %v667_v59 = vadd.f32 %v3620_v25, %v666_v57 }
 0x128   :  { %v1544_v60 = vpop.f32.mrf.mxu1 }
 0x129   :  { %v1012_v61 = vmax.f32 %v667_v59, 0.0  ;;  %v1545_v62 = vadd.f32 %v3694_v35, %v1544_v60  ;;  %3028 = vmatmul.msk.f32.gmra.mxu0 %vm203_vm1, %v105_v58  ;;  %v114_v59 = vld [vmem:[#allocation2 + $0x160] sm:$0xff] }
 0x12b   :  { %v1922_v63 = vmax.f32 %v1545_v62, 0.0  ;;  %3140 = vmatmul.msk.f32.gmra.mxu1 %vm1133_vm2, %v1012_v61 }
 0x12d   :  { %3252 = vmatmul.msk.f32.gmra.mxu2 %vm1133_vm2, %v1922_v63 }
 0x12e   :  { %v669_v0 = vpop.f32.mrf.mxu0 }
 0x12f   :  { %v670_v2 = vadd.f32 %v3620_v25, %v669_v0 }
 0x130   :  { %v1547_v3 = vpop.f32.mrf.mxu1 }
 0x131   :  { %v1013_v4 = vmax.f32 %v670_v2, 0.0  ;;  %v1548_v5 = vadd.f32 %v3694_v35, %v1547_v3  ;;  %3029 = vmatmul.msk.f32.gmra.mxu0 %vm203_vm1, %v106_v1  ;;  %v115_v2 = vld [vmem:[#allocation2 + $0x168] sm:$0xff] }
 0x133   :  { %v1923_v6 = vmax.f32 %v1548_v5, 0.0  ;;  %3141 = vmatmul.msk.f32.gmra.mxu1 %vm1133_vm2, %v1013_v4 }
 0x135   :  { %3253 = vmatmul.msk.f32.gmra.mxu2 %vm1133_vm2, %v1923_v6 }
 0x136   :  { %v672_v7 = vpop.f32.mrf.mxu0 }
 0x137   :  { %v673_v9 = vadd.f32 %v3620_v25, %v672_v7 }
 0x138   :  { %v1550_v10 = vpop.f32.mrf.mxu1 }
 0x139   :  { %v1014_v11 = vmax.f32 %v673_v9, 0.0  ;;  %v1551_v12 = vadd.f32 %v3694_v35, %v1550_v10  ;;  %3030 = vmatmul.msk.f32.gmra.mxu0 %vm203_vm1, %v107_v8  ;;  %v116_v9 = vld [vmem:[#allocation2 + $0x170] sm:$0xff] }
 0x13b   :  { %v1924_v13 = vmax.f32 %v1551_v12, 0.0  ;;  %3142 = vmatmul.msk.f32.gmra.mxu1 %vm1133_vm2, %v1014_v11 }
 0x13d   :  { %3254 = vmatmul.msk.f32.gmra.mxu2 %vm1133_vm2, %v1924_v13 }
 0x13e   :  { %v675_v14 = vpop.f32.mrf.mxu0 }
 0x13f   :  { %v676_v16 = vadd.f32 %v3620_v25, %v675_v14 }
 0x140   :  { %v1553_v17 = vpop.f32.mrf.mxu1 }
 0x141   :  { %v1015_v18 = vmax.f32 %v676_v16, 0.0  ;;  %v1554_v19 = vadd.f32 %v3694_v35, %v1553_v17  ;;  %3031 = vmatmul.msk.f32.gmra.mxu0 %vm203_vm1, %v108_v15  ;;  %v117_v16 = vld [vmem:[#allocation2 + $0x178] sm:$0xff] }
 0x143   :  { %v1925_v20 = vmax.f32 %v1554_v19, 0.0  ;;  %3143 = vmatmul.msk.f32.gmra.mxu1 %vm1133_vm2, %v1015_v18 }
 0x145   :  { %3255 = vmatmul.msk.f32.gmra.mxu2 %vm1133_vm2, %v1925_v20 }
 0x146   :  { %v678_v21 = vpop.f32.mrf.mxu0 }
 0x147   :  { %v679_v23 = vadd.f32 %v3620_v25, %v678_v21 }
 0x148   :  { %v1556_v24 = vpop.f32.mrf.mxu1 }
 0x149   :  { %v1016_v26 = vmax.f32 %v679_v23, 0.0  ;;  %v1557_v27 = vadd.f32 %v3694_v35, %v1556_v24  ;;  %3032 = vmatmul.msk.f32.gmra.mxu0 %vm203_vm1, %v109_v22  ;;  %v118_v23 = vld [vmem:[#allocation2 + $0x180] sm:$0xff] }
 0x14b   :  { %v1926_v28 = vmax.f32 %v1557_v27, 0.0  ;;  %3144 = vmatmul.msk.f32.gmra.mxu1 %vm1133_vm2, %v1016_v26 }
 0x14d   :  { %3256 = vmatmul.msk.f32.gmra.mxu2 %vm1133_vm2, %v1926_v28 }
 0x14e   :  { %v681_v29 = vpop.f32.mrf.mxu0 }
 0x14f   :  { %v682_v31 = vadd.f32 %v3620_v25, %v681_v29 }
 0x150   :  { %v1559_v32 = vpop.f32.mrf.mxu1 }
 0x151   :  { %v1017_v33 = vmax.f32 %v682_v31, 0.0  ;;  %v1560_v34 = vadd.f32 %v3694_v35, %v1559_v32  ;;  %3033 = vmatmul.msk.f32.gmra.mxu0 %vm203_vm1, %v110_v30  ;;  %v3784_v30 = vld [vmem:[%s4764_s6] ss:$0 sm:$0xff]  ;;  %v119_v32 = vld [vmem:[#allocation2 + $0x188] sm:$0xff] }
 0x153   :  { %v1927_v36 = vmax.f32 %v1560_v34, 0.0  ;;  %3145 = vmatmul.msk.f32.gmra.mxu1 %vm1133_vm2, %v1017_v33 }
 0x155   :  { %3257 = vmatmul.msk.f32.gmra.mxu2 %vm1133_vm2, %v1927_v36 }
 0x156   :  { %v684_v37 = vpop.f32.mrf.mxu0 }
 0x157   :  { %v685_v39 = vadd.f32 %v3620_v25, %v684_v37 }
 0x158   :  { %v1562_v40 = vpop.f32.mrf.mxu1 }
 0x159   :  { %v1018_v41 = vmax.f32 %v685_v39, 0.0  ;;  %v1563_v42 = vadd.f32 %v3694_v35, %v1562_v40  ;;  %3034 = vmatmul.msk.f32.gmra.mxu0 %vm203_vm1, %v111_v38 }
 0x15b   :  { %v1928_v43 = vmax.f32 %v1563_v42, 0.0  ;;  %3146 = vmatmul.msk.f32.gmra.mxu1 %vm1133_vm2, %v1018_v41  ;;  %v120_v42 = vld [vmem:[#allocation2 + $0x190] sm:$0xff] }
 0x15d   :  { %3258 = vmatmul.msk.f32.gmra.mxu2 %vm1133_vm2, %v1928_v43 }
 0x15e   :  { %v687_v44 = vpop.f32.mrf.mxu0 }
 0x15f   :  { %v688_v46 = vadd.f32 %v3620_v25, %v687_v44 }
 0x160   :  { %v1565_v47 = vpop.f32.mrf.mxu1 }
 0x161   :  { %v1019_v48 = vmax.f32 %v688_v46, 0.0  ;;  %v1566_v49 = vadd.f32 %v3694_v35, %v1565_v47  ;;  %3035 = vmatmul.msk.f32.gmra.mxu0 %vm203_vm1, %v112_v45 }
 0x163   :  { %v1929_v50 = vmax.f32 %v1566_v49, 0.0  ;;  %3147 = vmatmul.msk.f32.gmra.mxu1 %vm1133_vm2, %v1019_v48 }
 0x165   :  { %3259 = vmatmul.msk.f32.gmra.mxu2 %vm1133_vm2, %v1929_v50 }
 0x166   :  { %v690_v51 = vpop.f32.mrf.mxu0 }
 0x167   :  { %v691_v53 = vadd.f32 %v3620_v25, %v690_v51  ;;  %v121_v51 = vld [vmem:[#allocation2 + $0x198] sm:$0xff] }
 0x168   :  { %v1568_v54 = vpop.f32.mrf.mxu1 }
 0x169   :  { %v1020_v55 = vmax.f32 %v691_v53, 0.0  ;;  %v1569_v56 = vadd.f32 %v3694_v35, %v1568_v54  ;;  %3036 = vmatmul.msk.f32.gmra.mxu0 %vm203_vm1, %v113_v52 }
 0x16b   :  { %v1930_v57 = vmax.f32 %v1569_v56, 0.0  ;;  %3148 = vmatmul.msk.f32.gmra.mxu1 %vm1133_vm2, %v1020_v55 }
 0x16d   :  { %3260 = vmatmul.msk.f32.gmra.mxu2 %vm1133_vm2, %v1930_v57 }
 0x16e   :  { %v693_v58 = vpop.f32.mrf.mxu0 }
 0x16f   :  { %v694_v60 = vadd.f32 %v3620_v25, %v693_v58 }
 0x170   :  { %v1571_v61 = vpop.f32.mrf.mxu1 }
 0x171   :  { %v1021_v62 = vmax.f32 %v694_v60, 0.0  ;;  %v1572_v63 = vadd.f32 %v3694_v35, %v1571_v61  ;;  %3037 = vmatmul.msk.f32.gmra.mxu0 %vm203_vm1, %v114_v59  ;;  %v122_v60 = vld [vmem:[#allocation2 + $0x1a0] sm:$0xff] }
 0x173   :  { %v1931_v0 = vmax.f32 %v1572_v63, 0.0  ;;  %3149 = vmatmul.msk.f32.gmra.mxu1 %vm1133_vm2, %v1021_v62 }
 0x175   :  { %3261 = vmatmul.msk.f32.gmra.mxu2 %vm1133_vm2, %v1931_v0 }
 0x176   :  { %v696_v1 = vpop.f32.mrf.mxu0 }
 0x177   :  { %v697_v3 = vadd.f32 %v3620_v25, %v696_v1 }
 0x178   :  { %v1574_v4 = vpop.f32.mrf.mxu1 }
 0x179   :  { %v1022_v5 = vmax.f32 %v697_v3, 0.0  ;;  %v1575_v6 = vadd.f32 %v3694_v35, %v1574_v4  ;;  %3038 = vmatmul.msk.f32.gmra.mxu0 %vm203_vm1, %v115_v2 }
 0x17b   :  { %v1932_v7 = vmax.f32 %v1575_v6, 0.0  ;;  %3150 = vmatmul.msk.f32.gmra.mxu1 %vm1133_vm2, %v1022_v5  ;;  %v123_v5 = vld [vmem:[#allocation2 + $0x1a8] sm:$0xff] }
 0x17d   :  { %3262 = vmatmul.msk.f32.gmra.mxu2 %vm1133_vm2, %v1932_v7 }
 0x17e   :  { %v699_v8 = vpop.f32.mrf.mxu0 }
 0x17f   :  { %v700_v10 = vadd.f32 %v3620_v25, %v699_v8 }
 0x180   :  { %v1577_v11 = vpop.f32.mrf.mxu1 }
 0x181   :  { %v1023_v12 = vmax.f32 %v700_v10, 0.0  ;;  %v1578_v13 = vadd.f32 %v3694_v35, %v1577_v11  ;;  %3039 = vmatmul.msk.f32.gmra.mxu0 %vm203_vm1, %v116_v9 }
 0x183   :  { %v1933_v14 = vmax.f32 %v1578_v13, 0.0  ;;  %3151 = vmatmul.msk.f32.gmra.mxu1 %vm1133_vm2, %v1023_v12 }
 0x185   :  { %3263 = vmatmul.msk.f32.gmra.mxu2 %vm1133_vm2, %v1933_v14  ;;  %v124_v14 = vld [vmem:[#allocation2 + $0x1b0] sm:$0xff] }
 0x186   :  { %v702_v15 = vpop.f32.mrf.mxu0 }
 0x187   :  { %v703_v17 = vadd.f32 %v3620_v25, %v702_v15 }
 0x188   :  { %v1580_v18 = vpop.f32.mrf.mxu1 }
 0x189   :  { %v1024_v19 = vmax.f32 %v703_v17, 0.0  ;;  %v1581_v20 = vadd.f32 %v3694_v35, %v1580_v18  ;;  %3040 = vmatmul.msk.f32.gmra.mxu0 %vm203_vm1, %v117_v16 }
 0x18b   :  { %v1934_v21 = vmax.f32 %v1581_v20, 0.0  ;;  %3152 = vmatmul.msk.f32.gmra.mxu1 %vm1133_vm2, %v1024_v19 }
 0x18d   :  { %3264 = vmatmul.msk.f32.gmra.mxu2 %vm1133_vm2, %v1934_v21 }
 0x18e   :  { %v705_v22 = vpop.f32.mrf.mxu0 }
 0x18f   :  { %v706_v24 = vadd.f32 %v3620_v25, %v705_v22 }
 0x190   :  { %v1583_v26 = vpop.f32.mrf.mxu1 }
 0x191   :  { %v1025_v27 = vmax.f32 %v706_v24, 0.0  ;;  %v1584_v28 = vadd.f32 %v3694_v35, %v1583_v26  ;;  %3041 = vmatmul.msk.f32.gmra.mxu0 %vm203_vm1, %v118_v23  ;;  %v125_v23 = vld [vmem:[#allocation2 + $0x1b8] sm:$0xff] }
 0x193   :  { %v1935_v29 = vmax.f32 %v1584_v28, 0.0  ;;  %3153 = vmatmul.msk.f32.gmra.mxu1 %vm1133_vm2, %v1025_v27 }
 0x195   :  { %3265 = vmatmul.msk.f32.gmra.mxu2 %vm1133_vm2, %v1935_v29 }
 0x196   :  { %v708_v31 = vpop.f32.mrf.mxu0 }
 0x197   :  { %v709_v33 = vadd.f32 %v3620_v25, %v708_v31 }
 0x198   :  { %v1586_v34 = vpop.f32.mrf.mxu1  ;;  %v2460_v36 = vpop.f32.mrf.mxu2 }
 0x199   :  { %v1026_v37 = vmax.f32 %v709_v33, 0.0  ;;  %v1587_v38 = vadd.f32 %v3694_v35, %v1586_v34  ;;  %v2461_v39 = vadd.f32 %v3784_v30, %v2460_v36  ;;  %3042 = vmatmul.msk.f32.gmra.mxu0 %vm203_vm1, %v119_v32  ;;  %v126_v34 = vld [vmem:[#allocation2 + $0x1c0] sm:$0xff] }
 0x19b   :  { %v1936_v40 = vmax.f32 %v1587_v38, 0.0  ;;  %2844 = vst.msk [vmem:[#allocation8] sm:$0xff] %vm203_vm1, %v2461_v39  ;;  %3154 = vmatmul.msk.f32.gmra.mxu1 %vm1133_vm2, %v1026_v37 }
 0x19d   :  { %3266 = vmatmul.msk.f32.gmra.mxu2 %vm1133_vm2, %v1936_v40 }
 0x19e   :  { %v711_v41 = vpop.f32.mrf.mxu0 }
 0x19f   :  { %v712_v43 = vadd.f32 %v3620_v25, %v711_v41 }
 0x1a0   :  { %v1589_v44 = vpop.f32.mrf.mxu1  ;;  %v2463_v45 = vpop.f32.mrf.mxu2 }
 0x1a1   :  { %v1027_v46 = vmax.f32 %v712_v43, 0.0  ;;  %v1590_v47 = vadd.f32 %v3694_v35, %v1589_v44  ;;  %v2464_v48 = vadd.f32 %v3784_v30, %v2463_v45  ;;  %3043 = vmatmul.msk.f32.gmra.mxu0 %vm203_vm1, %v120_v42  ;;  %v127_v44 = vld [vmem:[#allocation2 + $0x1c8] sm:$0xff] }
 0x1a3   :  { %v1937_v49 = vmax.f32 %v1590_v47, 0.0  ;;  %2845 = vst.msk [vmem:[#allocation8 + $0x8] sm:$0xff] %vm203_vm1, %v2464_v48  ;;  %3155 = vmatmul.msk.f32.gmra.mxu1 %vm1133_vm2, %v1027_v46 }
 0x1a5   :  { %3267 = vmatmul.msk.f32.gmra.mxu2 %vm1133_vm2, %v1937_v49 }
 0x1a6   :  { %v714_v50 = vpop.f32.mrf.mxu0 }
 0x1a7   :  { %v715_v52 = vadd.f32 %v3620_v25, %v714_v50 }
 0x1a8   :  { %v1592_v53 = vpop.f32.mrf.mxu1  ;;  %v2466_v54 = vpop.f32.mrf.mxu2 }
 0x1a9   :  { %v1028_v55 = vmax.f32 %v715_v52, 0.0  ;;  %v1593_v56 = vadd.f32 %v3694_v35, %v1592_v53  ;;  %v2467_v57 = vadd.f32 %v3784_v30, %v2466_v54  ;;  %3044 = vmatmul.msk.f32.gmra.mxu0 %vm203_vm1, %v121_v51  ;;  %v128_v53 = vld [vmem:[#allocation2 + $0x1d0] sm:$0xff] }
 0x1ab   :  { %v1938_v58 = vmax.f32 %v1593_v56, 0.0  ;;  %2846 = vst.msk [vmem:[#allocation8 + $0x10] sm:$0xff] %vm203_vm1, %v2467_v57  ;;  %3156 = vmatmul.msk.f32.gmra.mxu1 %vm1133_vm2, %v1028_v55 }
 0x1ad   :  { %3268 = vmatmul.msk.f32.gmra.mxu2 %vm1133_vm2, %v1938_v58 }
 0x1ae   :  { %v717_v59 = vpop.f32.mrf.mxu0 }
 0x1af   :  { %v718_v61 = vadd.f32 %v3620_v25, %v717_v59 }
 0x1b0   :  { %v1595_v62 = vpop.f32.mrf.mxu1  ;;  %v2469_v63 = vpop.f32.mrf.mxu2 }
 0x1b1   :  { %v1029_v0 = vmax.f32 %v718_v61, 0.0  ;;  %v1596_v1 = vadd.f32 %v3694_v35, %v1595_v62  ;;  %v2470_v2 = vadd.f32 %v3784_v30, %v2469_v63  ;;  %3045 = vmatmul.msk.f32.gmra.mxu0 %vm203_vm1, %v122_v60  ;;  %v129_v62 = vld [vmem:[#allocation2 + $0x1d8] sm:$0xff] }
 0x1b3   :  { %v1939_v3 = vmax.f32 %v1596_v1, 0.0  ;;  %2847 = vst.msk [vmem:[#allocation8 + $0x18] sm:$0xff] %vm203_vm1, %v2470_v2  ;;  %3157 = vmatmul.msk.f32.gmra.mxu1 %vm1133_vm2, %v1029_v0 }
 0x1b5   :  { %3269 = vmatmul.msk.f32.gmra.mxu2 %vm1133_vm2, %v1939_v3 }
 0x1b6   :  { %v720_v4 = vpop.f32.mrf.mxu0 }
 0x1b7   :  { %v721_v6 = vadd.f32 %v3620_v25, %v720_v4 }
 0x1b8   :  { %v1598_v7 = vpop.f32.mrf.mxu1  ;;  %v2472_v8 = vpop.f32.mrf.mxu2 }
 0x1b9   :  { %v1030_v9 = vmax.f32 %v721_v6, 0.0  ;;  %v1599_v10 = vadd.f32 %v3694_v35, %v1598_v7  ;;  %v2473_v11 = vadd.f32 %v3784_v30, %v2472_v8  ;;  %3046 = vmatmul.msk.f32.gmra.mxu0 %vm203_vm1, %v123_v5  ;;  %v130_v7 = vld [vmem:[#allocation2 + $0x1e0] sm:$0xff] }
 0x1bb   :  { %v1940_v12 = vmax.f32 %v1599_v10, 0.0  ;;  %2848 = vst.msk [vmem:[#allocation8 + $0x20] sm:$0xff] %vm203_vm1, %v2473_v11  ;;  %3158 = vmatmul.msk.f32.gmra.mxu1 %vm1133_vm2, %v1030_v9 }
 0x1bd   :  { %3270 = vmatmul.msk.f32.gmra.mxu2 %vm1133_vm2, %v1940_v12 }
 0x1be   :  { %v723_v13 = vpop.f32.mrf.mxu0 }
 0x1bf   :  { %v724_v15 = vadd.f32 %v3620_v25, %v723_v13 }
 0x1c0   :  { %v1601_v16 = vpop.f32.mrf.mxu1  ;;  %v2475_v17 = vpop.f32.mrf.mxu2 }
 0x1c1   :  { %v1031_v18 = vmax.f32 %v724_v15, 0.0  ;;  %v1602_v19 = vadd.f32 %v3694_v35, %v1601_v16  ;;  %v2476_v20 = vadd.f32 %v3784_v30, %v2475_v17  ;;  %3047 = vmatmul.msk.f32.gmra.mxu0 %vm203_vm1, %v124_v14  ;;  %v131_v16 = vld [vmem:[#allocation2 + $0x1e8] sm:$0xff] }
 0x1c3   :  { %v1941_v21 = vmax.f32 %v1602_v19, 0.0  ;;  %2849 = vst.msk [vmem:[#allocation8 + $0x28] sm:$0xff] %vm203_vm1, %v2476_v20  ;;  %3159 = vmatmul.msk.f32.gmra.mxu1 %vm1133_vm2, %v1031_v18 }
 0x1c5   :  { %3271 = vmatmul.msk.f32.gmra.mxu2 %vm1133_vm2, %v1941_v21 }
 0x1c6   :  { %v726_v22 = vpop.f32.mrf.mxu0 }
 0x1c7   :  { %v727_v24 = vadd.f32 %v3620_v25, %v726_v22 }
 0x1c8   :  { %v1604_v26 = vpop.f32.mrf.mxu1  ;;  %v2478_v27 = vpop.f32.mrf.mxu2 }
 0x1c9   :  { %v1032_v28 = vmax.f32 %v727_v24, 0.0  ;;  %v1605_v29 = vadd.f32 %v3694_v35, %v1604_v26  ;;  %v2479_v31 = vadd.f32 %v3784_v30, %v2478_v27  ;;  %3048 = vmatmul.msk.f32.gmra.mxu0 %vm203_vm1, %v125_v23  ;;  %v132_v26 = vld [vmem:[#allocation2 + $0x1f0] sm:$0xff] }
 0x1cb   :  { %v1942_v32 = vmax.f32 %v1605_v29, 0.0  ;;  %2850 = vst.msk [vmem:[#allocation8 + $0x30] sm:$0xff] %vm203_vm1, %v2479_v31  ;;  %3160 = vmatmul.msk.f32.gmra.mxu1 %vm1133_vm2, %v1032_v28 }
 0x1cd   :  { %3272 = vmatmul.msk.f32.gmra.mxu2 %vm1133_vm2, %v1942_v32 }
 0x1ce   :  { %v729_v33 = vpop.f32.mrf.mxu0 }
 0x1cf   :  { %v730_v36 = vadd.f32 %v3620_v25, %v729_v33 }
 0x1d0   :  { %v1607_v37 = vpop.f32.mrf.mxu1  ;;  %v2481_v38 = vpop.f32.mrf.mxu2 }
 0x1d1   :  { %v1033_v39 = vmax.f32 %v730_v36, 0.0  ;;  %v1608_v40 = vadd.f32 %v3694_v35, %v1607_v37  ;;  %v2482_v41 = vadd.f32 %v3784_v30, %v2481_v38  ;;  %3049 = vmatmul.msk.f32.gmra.mxu0 %vm203_vm1, %v126_v34  ;;  %v133_v37 = vld [vmem:[#allocation2 + $0x1f8] sm:$0xff] }
 0x1d3   :  { %v1943_v42 = vmax.f32 %v1608_v40, 0.0  ;;  %2851 = vst.msk [vmem:[#allocation8 + $0x38] sm:$0xff] %vm203_vm1, %v2482_v41  ;;  %3161 = vmatmul.msk.f32.gmra.mxu1 %vm1133_vm2, %v1033_v39 }
 0x1d5   :  { %3273 = vmatmul.msk.f32.gmra.mxu2 %vm1133_vm2, %v1943_v42 }
 0x1d6   :  { %v732_v43 = vpop.f32.mrf.mxu0 }
 0x1d7   :  { %v733_v45 = vadd.f32 %v3620_v25, %v732_v43 }
 0x1d8   :  { %v1610_v46 = vpop.f32.mrf.mxu1  ;;  %v2484_v47 = vpop.f32.mrf.mxu2 }
 0x1d9   :  { %v1034_v48 = vmax.f32 %v733_v45, 0.0  ;;  %v1611_v49 = vadd.f32 %v3694_v35, %v1610_v46  ;;  %v2485_v50 = vadd.f32 %v3784_v30, %v2484_v47  ;;  %3050 = vmatmul.msk.f32.gmra.mxu0 %vm203_vm1, %v127_v44  ;;  %v134_v46 = vld [vmem:[#allocation2 + $0x200] sm:$0xff] }
 0x1db   :  { %v1944_v51 = vmax.f32 %v1611_v49, 0.0  ;;  %2852 = vst.msk [vmem:[#allocation8 + $0x40] sm:$0xff] %vm203_vm1, %v2485_v50  ;;  %3162 = vmatmul.msk.f32.gmra.mxu1 %vm1133_vm2, %v1034_v48 }
 0x1dd   :  { %3274 = vmatmul.msk.f32.gmra.mxu2 %vm1133_vm2, %v1944_v51 }
 0x1de   :  { %v735_v52 = vpop.f32.mrf.mxu0 }
 0x1df   :  { %v736_v54 = vadd.f32 %v3620_v25, %v735_v52 }
 0x1e0   :  { %v1613_v55 = vpop.f32.mrf.mxu1  ;;  %v2487_v56 = vpop.f32.mrf.mxu2 }
 0x1e1   :  { %v1035_v57 = vmax.f32 %v736_v54, 0.0  ;;  %v1614_v58 = vadd.f32 %v3694_v35, %v1613_v55  ;;  %v2488_v59 = vadd.f32 %v3784_v30, %v2487_v56  ;;  %3051 = vmatmul.msk.f32.gmra.mxu0 %vm203_vm1, %v128_v53  ;;  %v135_v55 = vld [vmem:[#allocation2 + $0x208] sm:$0xff] }
 0x1e3   :  { %v1945_v60 = vmax.f32 %v1614_v58, 0.0  ;;  %2853 = vst.msk [vmem:[#allocation8 + $0x48] sm:$0xff] %vm203_vm1, %v2488_v59  ;;  %3163 = vmatmul.msk.f32.gmra.mxu1 %vm1133_vm2, %v1035_v57 }
 0x1e5   :  { %3275 = vmatmul.msk.f32.gmra.mxu2 %vm1133_vm2, %v1945_v60 }
 0x1e6   :  { %v738_v61 = vpop.f32.mrf.mxu0 }
 0x1e7   :  { %v739_v63 = vadd.f32 %v3620_v25, %v738_v61 }
 0x1e8   :  { %v1616_v0 = vpop.f32.mrf.mxu1  ;;  %v2490_v1 = vpop.f32.mrf.mxu2 }
 0x1e9   :  { %v1036_v2 = vmax.f32 %v739_v63, 0.0  ;;  %v1617_v3 = vadd.f32 %v3694_v35, %v1616_v0  ;;  %v2491_v4 = vadd.f32 %v3784_v30, %v2490_v1  ;;  %3052 = vmatmul.msk.f32.gmra.mxu0 %vm203_vm1, %v129_v62  ;;  %v136_v0 = vld [vmem:[#allocation2 + $0x210] sm:$0xff] }
 0x1eb   :  { %v1946_v5 = vmax.f32 %v1617_v3, 0.0  ;;  %2854 = vst.msk [vmem:[#allocation8 + $0x50] sm:$0xff] %vm203_vm1, %v2491_v4  ;;  %3164 = vmatmul.msk.f32.gmra.mxu1 %vm1133_vm2, %v1036_v2 }
 0x1ed   :  { %3276 = vmatmul.msk.f32.gmra.mxu2 %vm1133_vm2, %v1946_v5 }
 0x1ee   :  { %v741_v6 = vpop.f32.mrf.mxu0 }
 0x1ef   :  { %v742_v8 = vadd.f32 %v3620_v25, %v741_v6 }
 0x1f0   :  { %v1619_v9 = vpop.f32.mrf.mxu1  ;;  %v2493_v10 = vpop.f32.mrf.mxu2 }
 0x1f1   :  { %v1037_v11 = vmax.f32 %v742_v8, 0.0  ;;  %v1620_v12 = vadd.f32 %v3694_v35, %v1619_v9  ;;  %v2494_v13 = vadd.f32 %v3784_v30, %v2493_v10  ;;  %3053 = vmatmul.msk.f32.gmra.mxu0 %vm203_vm1, %v130_v7  ;;  %v137_v9 = vld [vmem:[#allocation2 + $0x218] sm:$0xff]  ;;  %v3912_v10 = vld [vmem:[#allocation5] ss:$0 sm:$0xff] }
 0x1f3   :  { %v1947_v14 = vmax.f32 %v1620_v12, 0.0  ;;  %2855 = vst.msk [vmem:[#allocation8 + $0x58] sm:$0xff] %vm203_vm1, %v2494_v13  ;;  %3165 = vmatmul.msk.f32.gmra.mxu1 %vm1133_vm2, %v1037_v11 }
 0x1f5   :  { %3277 = vmatmul.msk.f32.gmra.mxu2 %vm1133_vm2, %v1947_v14 }
 0x1f6   :  { %v744_v15 = vpop.f32.mrf.mxu0 }
 0x1f7   :  { %v745_v17 = vadd.f32 %v3620_v25, %v744_v15 }
 0x1f8   :  { %v1622_v18 = vpop.f32.mrf.mxu1  ;;  %v2496_v19 = vpop.f32.mrf.mxu2 }
 0x1f9   :  { %v1038_v20 = vmax.f32 %v745_v17, 0.0  ;;  %v1623_v21 = vadd.f32 %v3694_v35, %v1622_v18  ;;  %v2497_v22 = vadd.f32 %v3784_v30, %v2496_v19  ;;  %3054 = vmatmul.msk.f32.gmra.mxu0 %vm203_vm1, %v131_v16  ;;  %v138_v18 = vld [vmem:[#allocation2 + $0x220] sm:$0xff] }
 0x1fb   :  { %v1948_v23 = vmax.f32 %v1623_v21, 0.0  ;;  %2856 = vst.msk [vmem:[#allocation8 + $0x60] sm:$0xff] %vm203_vm1, %v2497_v22  ;;  %3166 = vmatmul.msk.f32.gmra.mxu1 %vm1133_vm2, %v1038_v20 }
 0x1fd   :  { %3278 = vmatmul.msk.f32.gmra.mxu2 %vm1133_vm2, %v1948_v23 }
 0x1fe   :  { %v747_v24 = vpop.f32.mrf.mxu0 }
 0x1ff   :  { %v748_v27 = vadd.f32 %v3620_v25, %v747_v24 }
 0x200   :  { %v1625_v28 = vpop.f32.mrf.mxu1  ;;  %v2499_v29 = vpop.f32.mrf.mxu2 }
 0x201   :  { %v1039_v31 = vmax.f32 %v748_v27, 0.0  ;;  %v1626_v32 = vadd.f32 %v3694_v35, %v1625_v28  ;;  %v2500_v33 = vadd.f32 %v3784_v30, %v2499_v29  ;;  %3055 = vmatmul.msk.f32.gmra.mxu0 %vm203_vm1, %v132_v26  ;;  %v139_v28 = vld [vmem:[#allocation2 + $0x228] sm:$0xff] }
 0x203   :  { %v1949_v34 = vmax.f32 %v1626_v32, 0.0  ;;  %2857 = vst.msk [vmem:[#allocation8 + $0x68] sm:$0xff] %vm203_vm1, %v2500_v33  ;;  %3167 = vmatmul.msk.f32.gmra.mxu1 %vm1133_vm2, %v1039_v31 }
 0x205   :  { %3279 = vmatmul.msk.f32.gmra.mxu2 %vm1133_vm2, %v1949_v34 }
 0x206   :  { %v750_v36 = vpop.f32.mrf.mxu0 }
 0x207   :  { %v751_v38 = vadd.f32 %v3620_v25, %v750_v36 }
 0x208   :  { %v1628_v39 = vpop.f32.mrf.mxu1  ;;  %v2502_v40 = vpop.f32.mrf.mxu2 }
 0x209   :  { %v1040_v41 = vmax.f32 %v751_v38, 0.0  ;;  %v1629_v42 = vadd.f32 %v3694_v35, %v1628_v39  ;;  %v2503_v43 = vadd.f32 %v3784_v30, %v2502_v40  ;;  %3056 = vmatmul.msk.f32.gmra.mxu0 %vm203_vm1, %v133_v37  ;;  %v140_v39 = vld [vmem:[#allocation2 + $0x230] sm:$0xff] }
 0x20b   :  { %v1950_v44 = vmax.f32 %v1629_v42, 0.0  ;;  %2858 = vst.msk [vmem:[#allocation8 + $0x70] sm:$0xff] %vm203_vm1, %v2503_v43  ;;  %3168 = vmatmul.msk.f32.gmra.mxu1 %vm1133_vm2, %v1040_v41 }
 0x20d   :  { %3280 = vmatmul.msk.f32.gmra.mxu2 %vm1133_vm2, %v1950_v44 }
 0x20e   :  { %v753_v45 = vpop.f32.mrf.mxu0 }
 0x20f   :  { %v754_v47 = vadd.f32 %v3620_v25, %v753_v45 }
 0x210   :  { %v1631_v48 = vpop.f32.mrf.mxu1  ;;  %v2505_v49 = vpop.f32.mrf.mxu2 }
 0x211   :  { %v1041_v50 = vmax.f32 %v754_v47, 0.0  ;;  %v1632_v51 = vadd.f32 %v3694_v35, %v1631_v48  ;;  %v2506_v52 = vadd.f32 %v3784_v30, %v2505_v49  ;;  %3057 = vmatmul.msk.f32.gmra.mxu0 %vm203_vm1, %v134_v46  ;;  %v141_v48 = vld [vmem:[#allocation2 + $0x238] sm:$0xff] }
 0x213   :  { %v1951_v53 = vmax.f32 %v1632_v51, 0.0  ;;  %2859 = vst.msk [vmem:[#allocation8 + $0x78] sm:$0xff] %vm203_vm1, %v2506_v52  ;;  %3169 = vmatmul.msk.f32.gmra.mxu1 %vm1133_vm2, %v1041_v50 }
 0x215   :  { %3281 = vmatmul.msk.f32.gmra.mxu2 %vm1133_vm2, %v1951_v53 }
 0x216   :  { %v756_v54 = vpop.f32.mrf.mxu0 }
 0x217   :  { %v757_v56 = vadd.f32 %v3620_v25, %v756_v54 }
 0x218   :  { %v1634_v57 = vpop.f32.mrf.mxu1  ;;  %v2508_v58 = vpop.f32.mrf.mxu2 }
 0x219   :  { %v1042_v59 = vmax.f32 %v757_v56, 0.0  ;;  %v1635_v60 = vadd.f32 %v3694_v35, %v1634_v57  ;;  %v2509_v61 = vadd.f32 %v3784_v30, %v2508_v58  ;;  %3058 = vmatmul.msk.f32.gmra.mxu0 %vm203_vm1, %v135_v55  ;;  %v142_v57 = vld [vmem:[#allocation2 + $0x240] sm:$0xff] }
 0x21b   :  { %v1952_v62 = vmax.f32 %v1635_v60, 0.0  ;;  %2860 = vst.msk [vmem:[#allocation8 + $0x80] sm:$0xff] %vm203_vm1, %v2509_v61  ;;  %3170 = vmatmul.msk.f32.gmra.mxu1 %vm1133_vm2, %v1042_v59 }
 0x21d   :  { %3282 = vmatmul.msk.f32.gmra.mxu2 %vm1133_vm2, %v1952_v62 }
 0x21e   :  { %v759_v63 = vpop.f32.mrf.mxu0 }
 0x21f   :  { %v760_v1 = vadd.f32 %v3620_v25, %v759_v63 }
 0x220   :  { %v1637_v2 = vpop.f32.mrf.mxu1  ;;  %v2511_v3 = vpop.f32.mrf.mxu2 }
 0x221   :  { %v1043_v4 = vmax.f32 %v760_v1, 0.0  ;;  %v1638_v5 = vadd.f32 %v3694_v35, %v1637_v2  ;;  %v2512_v6 = vadd.f32 %v3784_v30, %v2511_v3  ;;  %3059 = vmatmul.msk.f32.gmra.mxu0 %vm203_vm1, %v136_v0  ;;  %v143_v2 = vld [vmem:[#allocation2 + $0x248] sm:$0xff] }
 0x223   :  { %v1953_v7 = vmax.f32 %v1638_v5, 0.0  ;;  %2861 = vst.msk [vmem:[#allocation8 + $0x88] sm:$0xff] %vm203_vm1, %v2512_v6  ;;  %3171 = vmatmul.msk.f32.gmra.mxu1 %vm1133_vm2, %v1043_v4 }
 0x225   :  { %3283 = vmatmul.msk.f32.gmra.mxu2 %vm1133_vm2, %v1953_v7 }
 0x226   :  { %v762_v8 = vpop.f32.mrf.mxu0 }
 0x227   :  { %v763_v25 = vadd.f32 %v3912_v10, %v762_v8 }
 0x228   :  { %v1640_v11 = vpop.f32.mrf.mxu1  ;;  %v2514_v12 = vpop.f32.mrf.mxu2 }
 0x229   :  { %v1044_v13 = vmax.f32 %v763_v25, 0.0  ;;  %v1641_v14 = vadd.f32 %v3694_v35, %v1640_v11  ;;  %v2515_v15 = vadd.f32 %v3784_v30, %v2514_v12  ;;  %3060 = vmatmul.msk.f32.gmra.mxu0 %vm203_vm1, %v137_v9  ;;  %v144_v11 = vld [vmem:[#allocation2 + $0x250] sm:$0xff] }
 0x22b   :  { %v1954_v16 = vmax.f32 %v1641_v14, 0.0  ;;  %2862 = vst.msk [vmem:[#allocation8 + $0x90] sm:$0xff] %vm203_vm1, %v2515_v15  ;;  %3172 = vmatmul.msk.f32.gmra.mxu1 %vm1133_vm2, %v1044_v13 }
 0x22d   :  { %3284 = vmatmul.msk.f32.gmra.mxu2 %vm1133_vm2, %v1954_v16 }
 0x22e   :  { %v765_v17 = vpop.f32.mrf.mxu0 }
 0x22f   :  { %v766_v19 = vadd.f32 %v3912_v10, %v765_v17 }
 0x230   :  { %v1643_v20 = vpop.f32.mrf.mxu1  ;;  %v2517_v21 = vpop.f32.mrf.mxu2 }
 0x231   :  { %v1045_v22 = vmax.f32 %v766_v19, 0.0  ;;  %v1644_v23 = vadd.f32 %v3694_v35, %v1643_v20  ;;  %v2518_v24 = vadd.f32 %v3784_v30, %v2517_v21  ;;  %3061 = vmatmul.msk.f32.gmra.mxu0 %vm203_vm1, %v138_v18  ;;  %v145_v20 = vld [vmem:[#allocation2 + $0x258] sm:$0xff] }
 0x233   :  { %v1955_v26 = vmax.f32 %v1644_v23, 0.0  ;;  %2863 = vst.msk [vmem:[#allocation8 + $0x98] sm:$0xff] %vm203_vm1, %v2518_v24  ;;  %3173 = vmatmul.msk.f32.gmra.mxu1 %vm1133_vm2, %v1045_v22 }
 0x235   :  { %3285 = vmatmul.msk.f32.gmra.mxu2 %vm1133_vm2, %v1955_v26  ;;  %v3971_v26 = vld [vmem:[#allocation7] ss:$0 sm:$0xff] }
 0x236   :  { %v768_v27 = vpop.f32.mrf.mxu0 }
 0x237   :  { %v769_v29 = vadd.f32 %v3912_v10, %v768_v27 }
 0x238   :  { %v1646_v31 = vpop.f32.mrf.mxu1  ;;  %v2520_v32 = vpop.f32.mrf.mxu2 }
 0x239   :  { %v1046_v33 = vmax.f32 %v769_v29, 0.0  ;;  %v1647_v34 = vadd.f32 %v3694_v35, %v1646_v31  ;;  %v2521_v36 = vadd.f32 %v3784_v30, %v2520_v32  ;;  %3062 = vmatmul.msk.f32.gmra.mxu0 %vm203_vm1, %v139_v28  ;;  %v146_v31 = vld [vmem:[#allocation2 + $0x260] sm:$0xff] }
 0x23b   :  { %v1956_v37 = vmax.f32 %v1647_v34, 0.0  ;;  %2864 = vst.msk [vmem:[#allocation8 + $0xa0] sm:$0xff] %vm203_vm1, %v2521_v36  ;;  %3174 = vmatmul.msk.f32.gmra.mxu1 %vm1133_vm2, %v1046_v33 }
 0x23d   :  { %3286 = vmatmul.msk.f32.gmra.mxu2 %vm1133_vm2, %v1956_v37 }
 0x23e   :  { %v771_v38 = vpop.f32.mrf.mxu0 }
 0x23f   :  { %v772_v40 = vadd.f32 %v3912_v10, %v771_v38 }
 0x240   :  { %v1649_v41 = vpop.f32.mrf.mxu1  ;;  %v2523_v42 = vpop.f32.mrf.mxu2 }
 0x241   :  { %v1047_v43 = vmax.f32 %v772_v40, 0.0  ;;  %v1650_v44 = vadd.f32 %v3694_v35, %v1649_v41  ;;  %v2524_v45 = vadd.f32 %v3784_v30, %v2523_v42  ;;  %3063 = vmatmul.msk.f32.gmra.mxu0 %vm203_vm1, %v140_v39  ;;  %v147_v41 = vld [vmem:[#allocation2 + $0x268] sm:$0xff] }
 0x243   :  { %v1957_v46 = vmax.f32 %v1650_v44, 0.0  ;;  %2865 = vst.msk [vmem:[#allocation8 + $0xa8] sm:$0xff] %vm203_vm1, %v2524_v45  ;;  %3175 = vmatmul.msk.f32.gmra.mxu1 %vm1133_vm2, %v1047_v43 }
 0x245   :  { %3287 = vmatmul.msk.f32.gmra.mxu2 %vm1133_vm2, %v1957_v46 }
 0x246   :  { %v774_v47 = vpop.f32.mrf.mxu0 }
 0x247   :  { %v775_v49 = vadd.f32 %v3912_v10, %v774_v47 }
 0x248   :  { %v1652_v50 = vpop.f32.mrf.mxu1  ;;  %v2526_v51 = vpop.f32.mrf.mxu2 }
 0x249   :  { %v1048_v52 = vmax.f32 %v775_v49, 0.0  ;;  %v1653_v53 = vadd.f32 %v3694_v35, %v1652_v50  ;;  %v2527_v54 = vadd.f32 %v3784_v30, %v2526_v51  ;;  %3064 = vmatmul.msk.f32.gmra.mxu0 %vm203_vm1, %v141_v48  ;;  %v167_v48 = vld [vmem:[#allocation2 + $0x308] sm:$0xff]  ;;  %v3405_v50 = vld [vmem:[%s4763_s5 + $0x38] sm:$0xff] }
 0x24a   :  { %3090 = vmatmul.msk.f32.vlgmr.msra.gmra.mxu3 %vm203_vm1, %v167_v48  ;;  %v153_v48 = vld [vmem:[#allocation2 + $0x298] sm:$0xff] }
 0x24b   :  { %v1958_v55 = vmax.f32 %v1653_v53, 0.0  ;;  %2866 = vst.msk [vmem:[#allocation8 + $0xb0] sm:$0xff] %vm203_vm1, %v2527_v54  ;;  %3176 = vmatmul.msk.f32.gmra.mxu1 %vm1133_vm2, %v1048_v52  ;;  %3386 = vmatpush.msra.mxu3 %v3405_v50  ;;  %v148_v52 = vld [vmem:[#allocation2 + $0x270] sm:$0xff] }
 0x24c   :  { %v3406_v53 = vld [vmem:[%s4763_s5 + $0x30] sm:$0xff] }
 0x24d   :  { %3288 = vmatmul.msk.f32.gmra.mxu2 %vm1133_vm2, %v1958_v55  ;;  %3387 = vmatpush.msra.mxu3 %v3406_v53 }
 0x24e   :  { %v777_v56 = vpop.f32.mrf.mxu0 }
 0x24f   :  { %v778_v58 = vadd.f32 %v3912_v10, %v777_v56 }
 0x250   :  { %v1655_v59 = vpop.f32.mrf.mxu1  ;;  %v2529_v60 = vpop.f32.mrf.mxu2 }
 0x251   :  { %v1049_v61 = vmax.f32 %v778_v58, 0.0  ;;  %v1656_v62 = vadd.f32 %v3694_v35, %v1655_v59  ;;  %v2530_v63 = vadd.f32 %v3784_v30, %v2529_v60  ;;  %3065 = vmatmul.msk.f32.gmra.mxu0 %vm203_vm1, %v142_v57  ;;  %v3407_v57 = vld [vmem:[%s4763_s5 + $0x28] sm:$0xff] }
 0x252   :  { %3388 = vmatpush.msra.mxu3 %v3407_v57 }
 0x253   :  { %v1959_v0 = vmax.f32 %v1656_v62, 0.0  ;;  %2867 = vst.msk [vmem:[#allocation8 + $0xb8] sm:$0xff] %vm203_vm1, %v2530_v63  ;;  %3177 = vmatmul.msk.f32.gmra.mxu1 %vm1133_vm2, %v1049_v61  ;;  %v168_v61 = vld [vmem:[#allocation2 + $0x310] sm:$0xff]  ;;  %v3408_v62 = vld [vmem:[%s4763_s5 + $0x20] sm:$0xff] }
 0x254   :  { %3389 = vmatpush.msra.mxu3 %v3408_v62 }
 0x255   :  { %3289 = vmatmul.msk.f32.gmra.mxu2 %vm1133_vm2, %v1959_v0  ;;  %3091 = vmatmul.msk.f32.gmra.mxu3 %vm203_vm1, %v168_v61  ;;  %v3409_v0 = vld [vmem:[%s4763_s5 + $0x18] sm:$0xff] }
 0x256   :  { %v780_v1 = vpop.f32.mrf.mxu0  ;;  %3390 = vmatpush.msra.mxu3 %v3409_v0 }
 0x257   :  { %v781_v3 = vadd.f32 %v3912_v10, %v780_v1 }
 0x258   :  { %v1658_v4 = vpop.f32.mrf.mxu1  ;;  %v2532_v5 = vpop.f32.mrf.mxu2 }
 0x259   :  { %v1050_v6 = vmax.f32 %v781_v3, 0.0  ;;  %v1659_v7 = vadd.f32 %v3694_v35, %v1658_v4  ;;  %v2533_v8 = vadd.f32 %v3784_v30, %v2532_v5  ;;  %3066 = vmatmul.msk.f32.gmra.mxu0 %vm203_vm1, %v143_v2  ;;  %v149_v2 = vld [vmem:[#allocation2 + $0x278] sm:$0xff]  ;;  %v3410_v3 = vld [vmem:[%s4763_s5 + $0x10] sm:$0xff] }
 0x25a   :  { %3391 = vmatpush.msra.mxu3 %v3410_v3 }
 0x25b   :  { %v1960_v9 = vmax.f32 %v1659_v7, 0.0  ;;  %2868 = vst.msk [vmem:[#allocation8 + $0xc0] sm:$0xff] %vm203_vm1, %v2533_v8  ;;  %3178 = vmatmul.msk.f32.gmra.mxu1 %vm1133_vm2, %v1050_v6  ;;  %v3411_v7 = vld [vmem:[%s4763_s5 + $0x8] sm:$0xff] }
 0x25c   :  { %3392 = vmatpush.msra.mxu3 %v3411_v7 }
 0x25d   :  { %3290 = vmatmul.msk.f32.gmra.mxu2 %vm1133_vm2, %v1960_v9 }
 0x25e   :  { %v783_v25 = vpop.f32.mrf.mxu0 }
 0x25f   :  { %v784_v12 = vadd.f32 %v3912_v10, %v783_v25 }
 0x260   :  { %v1661_v13 = vpop.f32.mrf.mxu1  ;;  %v2535_v14 = vpop.f32.mrf.mxu2 }
 0x261   :  { %v1051_v15 = vmax.f32 %v784_v12, 0.0  ;;  %v1662_v16 = vadd.f32 %v3694_v35, %v1661_v13  ;;  %v2536_v17 = vadd.f32 %v3784_v30, %v2535_v14  ;;  %3067 = vmatmul.msk.f32.gmra.mxu0 %vm203_vm1, %v144_v11  ;;  %v169_v11 = vld [vmem:[#allocation2 + $0x318] sm:$0xff]  ;;  %v3412_v12 = vld [vmem:[%s4763_s5] sm:$0xff] }
 0x262   :  { %3393 = vmatpush.msra.mxu3 %v3412_v12 }
 0x263   :  { %v1961_v18 = vmax.f32 %v1662_v16, 0.0  ;;  %2869 = vst.msk [vmem:[#allocation8 + $0xc8] sm:$0xff] %vm203_vm1, %v2536_v17  ;;  %3179 = vmatmul.msk.f32.gmra.mxu1 %vm1133_vm2, %v1051_v15  ;;  %3092 = vmatmul.msk.f32.gmra.mxu3 %vm203_vm1, %v169_v11  ;;  %v150_v15 = vld [vmem:[#allocation2 + $0x280] sm:$0xff]  ;;  %v175_v11 = vld [vmem:[#allocation2 + $0x348] sm:$0xff] }
 0x265   :  { %3291 = vmatmul.msk.f32.gmra.mxu2 %vm1133_vm2, %v1961_v18 }
 0x266   :  { %v786_v19 = vpop.f32.mrf.mxu0 }
 0x267   :  { %v787_v21 = vadd.f32 %v3912_v10, %v786_v19 }
 0x268   :  { %v1664_v22 = vpop.f32.mrf.mxu1  ;;  %v2538_v23 = vpop.f32.mrf.mxu2 }
 0x269   :  { %v1052_v24 = vmax.f32 %v787_v21, 0.0  ;;  %v1665_v35 = vadd.f32 %v3971_v26, %v1664_v22  ;;  %v2539_v27 = vadd.f32 %v3784_v30, %v2538_v23  ;;  %3068 = vmatmul.msk.f32.gmra.mxu0 %vm203_vm1, %v145_v20  ;;  %v170_v22 = vld [vmem:[#allocation2 + $0x320] sm:$0xff] }
 0x26b   :  { %v1962_v28 = vmax.f32 %v1665_v35, 0.0  ;;  %2870 = vst.msk [vmem:[#allocation8 + $0xd0] sm:$0xff] %vm203_vm1, %v2539_v27  ;;  %3180 = vmatmul.msk.f32.gmra.mxu1 %vm1133_vm2, %v1052_v24  ;;  %3093 = vmatmul.msk.f32.gmra.mxu3 %vm203_vm1, %v170_v22  ;;  %v151_v35 = vld [vmem:[#allocation2 + $0x288] sm:$0xff] }
 0x26d   :  { %3292 = vmatmul.msk.f32.gmra.mxu2 %vm1133_vm2, %v1962_v28 }
 0x26e   :  { %v789_v29 = vpop.f32.mrf.mxu0 }
 0x26f   :  { %v790_v32 = vadd.f32 %v3912_v10, %v789_v29 }
 0x270   :  { %v1667_v33 = vpop.f32.mrf.mxu1  ;;  %v2541_v34 = vpop.f32.mrf.mxu2 }
 0x271   :  { %v1053_v36 = vmax.f32 %v790_v32, 0.0  ;;  %v1668_v37 = vadd.f32 %v3971_v26, %v1667_v33  ;;  %v2542_v38 = vadd.f32 %v3784_v30, %v2541_v34  ;;  %3069 = vmatmul.msk.f32.gmra.mxu0 %vm203_vm1, %v146_v31  ;;  %v171_v34 = vld [vmem:[#allocation2 + $0x328] sm:$0xff] }
 0x273   :  { %v1963_v39 = vmax.f32 %v1668_v37, 0.0  ;;  %2871 = vst.msk [vmem:[#allocation8 + $0xd8] sm:$0xff] %vm203_vm1, %v2542_v38  ;;  %3181 = vmatmul.msk.f32.gmra.mxu1 %vm1133_vm2, %v1053_v36  ;;  %3094 = vmatmul.msk.f32.gmra.mxu3 %vm203_vm1, %v171_v34  ;;  %v152_v38 = vld [vmem:[#allocation2 + $0x290] sm:$0xff] }
 0x275   :  { %3293 = vmatmul.msk.f32.gmra.mxu2 %vm1133_vm2, %v1963_v39 }
 0x276   :  { %v792_v40 = vpop.f32.mrf.mxu0 }
 0x277   :  { %v793_v42 = vadd.f32 %v3912_v10, %v792_v40 }
 0x278   :  { %v1670_v43 = vpop.f32.mrf.mxu1  ;;  %v2544_v44 = vpop.f32.mrf.mxu2 }
 0x279   :  { %v1054_v45 = vmax.f32 %v793_v42, 0.0  ;;  %v1671_v46 = vadd.f32 %v3971_v26, %v1670_v43  ;;  %v2545_v47 = vadd.f32 %v3784_v30, %v2544_v44  ;;  %3070 = vmatmul.msk.f32.gmra.mxu0 %vm203_vm1, %v147_v41 }
 0x27b   :  { %v1964_v49 = vmax.f32 %v1671_v46, 0.0  ;;  %2872 = vst.msk [vmem:[#allocation8 + $0xe0] sm:$0xff] %vm203_vm1, %v2545_v47  ;;  %3182 = vmatmul.msk.f32.gmra.mxu1 %vm1133_vm2, %v1054_v45  ;;  %v172_v45 = vld [vmem:[#allocation2 + $0x330] sm:$0xff] }
 0x27c   :  { %3095 = vmatmul.msk.f32.gmra.mxu3 %vm203_vm1, %v172_v45 }
 0x27d   :  { %3294 = vmatmul.msk.f32.gmra.mxu2 %vm1133_vm2, %v1964_v49 }
 0x27e   :  { %v795_v51 = vpop.f32.mrf.mxu0 }
 0x27f   :  { %v796_v54 = vadd.f32 %v3912_v10, %v795_v51 }
 0x280   :  { %v1673_v55 = vpop.f32.mrf.mxu1  ;;  %v2547_v56 = vpop.f32.mrf.mxu2 }
 0x281   :  { %v1055_v58 = vmax.f32 %v796_v54, 0.0  ;;  %v1674_v59 = vadd.f32 %v3971_v26, %v1673_v55  ;;  %v2548_v60 = vadd.f32 %v3784_v30, %v2547_v56  ;;  %3071 = vmatmul.msk.f32.gmra.mxu0 %vm203_vm1, %v148_v52  ;;  %v173_v55 = vld [vmem:[#allocation2 + $0x338] sm:$0xff] }
 0x283   :  { %v1965_v63 = vmax.f32 %v1674_v59, 0.0  ;;  %2873 = vst.msk [vmem:[#allocation8 + $0xe8] sm:$0xff] %vm203_vm1, %v2548_v60  ;;  %3183 = vmatmul.msk.f32.gmra.mxu1 %vm1133_vm2, %v1055_v58  ;;  %v154_v58 = vld [vmem:[#allocation2 + $0x2a0] sm:$0xff] }
 0x284   :  { %3096 = vmatmul.msk.f32.gmra.mxu3 %vm203_vm1, %v173_v55 }
 0x285   :  { %3295 = vmatmul.msk.f32.gmra.mxu2 %vm1133_vm2, %v1965_v63 }
 0x286   :  { %v798_v1 = vpop.f32.mrf.mxu0 }
 0x287   :  { %v799_v4 = vadd.f32 %v3912_v10, %v798_v1  ;;  %v174_v1 = vld [vmem:[#allocation2 + $0x340] sm:$0xff] }
 0x288   :  { %v1676_v5 = vpop.f32.mrf.mxu1  ;;  %v2550_v6 = vpop.f32.mrf.mxu2 }
 0x289   :  { %v1056_v8 = vmax.f32 %v799_v4, 0.0  ;;  %v1677_v9 = vadd.f32 %v3971_v26, %v1676_v5  ;;  %v2551_v25 = vadd.f32 %v3784_v30, %v2550_v6  ;;  %3072 = vmatmul.msk.f32.gmra.mxu0 %vm203_vm1, %v149_v2  ;;  %v155_v4 = vld [vmem:[#allocation2 + $0x2a8] sm:$0xff] }
 0x28b   :  { %v1966_v13 = vmax.f32 %v1677_v9, 0.0  ;;  %2874 = vst.msk [vmem:[#allocation8 + $0xf0] sm:$0xff] %vm203_vm1, %v2551_v25  ;;  %3184 = vmatmul.msk.f32.gmra.mxu1 %vm1133_vm2, %v1056_v8 }
 0x28c   :  { %3097 = vmatmul.msk.f32.gmra.mxu3 %vm203_vm1, %v174_v1 }
 0x28d   :  { %3296 = vmatmul.msk.f32.gmra.mxu2 %vm1133_vm2, %v1966_v13 }
 0x28e   :  { %v801_v14 = vpop.f32.mrf.mxu0 }
 0x28f   :  { %v802_v16 = vadd.f32 %v3912_v10, %v801_v14  ;;  %v156_v14 = vld [vmem:[#allocation2 + $0x2b0] sm:$0xff] }
 0x290   :  { %v1679_v17 = vpop.f32.mrf.mxu1  ;;  %v2553_v18 = vpop.f32.mrf.mxu2 }
 0x291   :  { %v1057_v19 = vmax.f32 %v802_v16, 0.0  ;;  %v1680_v20 = vadd.f32 %v3971_v26, %v1679_v17  ;;  %v2554_v21 = vadd.f32 %v3784_v30, %v2553_v18  ;;  %3073 = vmatmul.msk.f32.gmra.mxu0 %vm203_vm1, %v150_v15 }
 0x293   :  { %v1967_v23 = vmax.f32 %v1680_v20, 0.0  ;;  %2875 = vst.msk [vmem:[#allocation8 + $0xf8] sm:$0xff] %vm203_vm1, %v2554_v21  ;;  %3185 = vmatmul.msk.f32.gmra.mxu1 %vm1133_vm2, %v1057_v19  ;;  %v4087_v19 = vld [vmem:[%s4764_s6] ss:$0 sm:$0xff]  ;;  %v176_v21 = vld [vmem:[#allocation2 + $0x350] sm:$0xff] }
 0x294   :  { %3098 = vmatmul.msk.f32.gmra.mxu3 %vm203_vm1, %v175_v11 }
 0x295   :  { %3297 = vmatmul.msk.f32.gmra.mxu2 %vm1133_vm2, %v1967_v23 }
 0x296   :  { %v804_v24 = vpop.f32.mrf.mxu0 }
 0x297   :  { %v805_v27 = vadd.f32 %v3912_v10, %v804_v24  ;;  %v157_v24 = vld [vmem:[#allocation2 + $0x2b8] sm:$0xff] }
 0x298   :  { %v1682_v28 = vpop.f32.mrf.mxu1  ;;  %v2556_v29 = vpop.f32.mrf.mxu2 }
 0x299   :  { %v1058_v31 = vmax.f32 %v805_v27, 0.0  ;;  %v1683_v32 = vadd.f32 %v3971_v26, %v1682_v28  ;;  %v2557_v33 = vadd.f32 %v3784_v30, %v2556_v29  ;;  %3074 = vmatmul.msk.f32.gmra.mxu0 %vm203_vm1, %v151_v35 }
 0x29b   :  { %v1968_v36 = vmax.f32 %v1683_v32, 0.0  ;;  %2876 = vst.msk [vmem:[#allocation8 + $0x100] sm:$0xff] %vm203_vm1, %v2557_v33  ;;  %3186 = vmatmul.msk.f32.gmra.mxu1 %vm1133_vm2, %v1058_v31  ;;  %v177_v33 = vld [vmem:[#allocation2 + $0x358] sm:$0xff] }
 0x29c   :  { %3099 = vmatmul.msk.f32.gmra.mxu3 %vm203_vm1, %v176_v21 }
 0x29d   :  { %3298 = vmatmul.msk.f32.gmra.mxu2 %vm1133_vm2, %v1968_v36 }
 0x29e   :  { %v807_v37 = vpop.f32.mrf.mxu0 }
 0x29f   :  { %v808_v39 = vadd.f32 %v3912_v10, %v807_v37  ;;  %v158_v37 = vld [vmem:[#allocation2 + $0x2c0] sm:$0xff] }
 0x2a0   :  { %v1685_v40 = vpop.f32.mrf.mxu1  ;;  %v2559_v41 = vpop.f32.mrf.mxu2 }
 0x2a1   :  { %v1059_v42 = vmax.f32 %v808_v39, 0.0  ;;  %v1686_v43 = vadd.f32 %v3971_v26, %v1685_v40  ;;  %v2560_v44 = vadd.f32 %v3784_v30, %v2559_v41  ;;  %3075 = vmatmul.msk.f32.gmra.mxu0 %vm203_vm1, %v152_v38 }
 0x2a3   :  { %v1969_v46 = vmax.f32 %v1686_v43, 0.0  ;;  %2877 = vst.msk [vmem:[#allocation8 + $0x108] sm:$0xff] %vm203_vm1, %v2560_v44  ;;  %3187 = vmatmul.msk.f32.gmra.mxu1 %vm1133_vm2, %v1059_v42  ;;  %v178_v44 = vld [vmem:[#allocation2 + $0x360] sm:$0xff] }
 0x2a4   :  { %3100 = vmatmul.msk.f32.gmra.mxu3 %vm203_vm1, %v177_v33 }
 0x2a5   :  { %3299 = vmatmul.msk.f32.gmra.mxu2 %vm1133_vm2, %v1969_v46 }
 0x2a6   :  { %v810_v47 = vpop.f32.mrf.mxu0 }
 0x2a7   :  { %v811_v49 = vadd.f32 %v3912_v10, %v810_v47  ;;  %v159_v47 = vld [vmem:[#allocation2 + $0x2c8] sm:$0xff] }
 0x2a8   :  { %v1688_v50 = vpop.f32.mrf.mxu1  ;;  %v2562_v51 = vpop.f32.mrf.mxu2 }
 0x2a9   :  { %v1060_v52 = vmax.f32 %v811_v49, 0.0  ;;  %v1689_v53 = vadd.f32 %v3971_v26, %v1688_v50  ;;  %v2563_v54 = vadd.f32 %v3784_v30, %v2562_v51  ;;  %3076 = vmatmul.msk.f32.gmra.mxu0 %vm203_vm1, %v153_v48 }
 0x2ab   :  { %v1970_v56 = vmax.f32 %v1689_v53, 0.0  ;;  %2878 = vst.msk [vmem:[#allocation8 + $0x110] sm:$0xff] %vm203_vm1, %v2563_v54  ;;  %3188 = vmatmul.msk.f32.gmra.mxu1 %vm1133_vm2, %v1060_v52  ;;  %v179_v54 = vld [vmem:[#allocation2 + $0x368] sm:$0xff] }
 0x2ac   :  { %3101 = vmatmul.msk.f32.gmra.mxu3 %vm203_vm1, %v178_v44  ;;  %v184_v44 = vld [vmem:[#allocation2 + $0x390] sm:$0xff] }
 0x2ad   :  { %3300 = vmatmul.msk.f32.gmra.mxu2 %vm1133_vm2, %v1970_v56 }
 0x2ae   :  { %v813_v57 = vpop.f32.mrf.mxu0 }
 0x2af   :  { %v814_v59 = vadd.f32 %v3912_v10, %v813_v57  ;;  %v160_v57 = vld [vmem:[#allocation2 + $0x2d0] sm:$0xff] }
 0x2b0   :  { %v1691_v60 = vpop.f32.mrf.mxu1  ;;  %v2565_v61 = vpop.f32.mrf.mxu2 }
 0x2b1   :  { %v1061_v62 = vmax.f32 %v814_v59, 0.0  ;;  %v1692_v63 = vadd.f32 %v3971_v26, %v1691_v60  ;;  %v2566_v0 = vadd.f32 %v3784_v30, %v2565_v61  ;;  %3077 = vmatmul.msk.f32.gmra.mxu0 %vm203_vm1, %v154_v58 }
 0x2b3   :  { %v1971_v2 = vmax.f32 %v1692_v63, 0.0  ;;  %2879 = vst.msk [vmem:[#allocation8 + $0x118] sm:$0xff] %vm203_vm1, %v2566_v0  ;;  %3189 = vmatmul.msk.f32.gmra.mxu1 %vm1133_vm2, %v1061_v62  ;;  %v180_v0 = vld [vmem:[#allocation2 + $0x370] sm:$0xff] }
 0x2b4   :  { %3102 = vmatmul.msk.f32.gmra.mxu3 %vm203_vm1, %v179_v54 }
 0x2b5   :  { %3301 = vmatmul.msk.f32.gmra.mxu2 %vm1133_vm2, %v1971_v2 }
 0x2b6   :  { %v816_v3 = vpop.f32.mrf.mxu0 }
 0x2b7   :  { %v817_v5 = vadd.f32 %v3912_v10, %v816_v3  ;;  %v161_v3 = vld [vmem:[#allocation2 + $0x2d8] sm:$0xff] }
 0x2b8   :  { %v1694_v6 = vpop.f32.mrf.mxu1  ;;  %v2568_v7 = vpop.f32.mrf.mxu2 }
 0x2b9   :  { %v1062_v8 = vmax.f32 %v817_v5, 0.0  ;;  %v1695_v9 = vadd.f32 %v3971_v26, %v1694_v6  ;;  %v2569_v25 = vadd.f32 %v3784_v30, %v2568_v7  ;;  %3078 = vmatmul.msk.f32.gmra.mxu0 %vm203_vm1, %v155_v4 }
 0x2bb   :  { %v1972_v12 = vmax.f32 %v1695_v9, 0.0  ;;  %2880 = vst.msk [vmem:[#allocation8 + $0x120] sm:$0xff] %vm203_vm1, %v2569_v25  ;;  %3190 = vmatmul.msk.f32.gmra.mxu1 %vm1133_vm2, %v1062_v8  ;;  %v181_v25 = vld [vmem:[#allocation2 + $0x378] sm:$0xff] }
 0x2bc   :  { %3103 = vmatmul.msk.f32.gmra.mxu3 %vm203_vm1, %v180_v0 }
 0x2bd   :  { %3302 = vmatmul.msk.f32.gmra.mxu2 %vm1133_vm2, %v1972_v12 }
 0x2be   :  { %v819_v13 = vpop.f32.mrf.mxu0 }
 0x2bf   :  { %v820_v15 = vadd.f32 %v3912_v10, %v819_v13  ;;  %v162_v13 = vld [vmem:[#allocation2 + $0x2e0] sm:$0xff] }
 0x2c0   :  { %v1697_v16 = vpop.f32.mrf.mxu1  ;;  %v2571_v17 = vpop.f32.mrf.mxu2 }
 0x2c1   :  { %v1063_v18 = vmax.f32 %v820_v15, 0.0  ;;  %v1698_v30 = vadd.f32 %v3971_v26, %v1697_v16  ;;  %v2572_v20 = vadd.f32 %v4087_v19, %v2571_v17  ;;  %3079 = vmatmul.msk.f32.gmra.mxu0 %vm203_vm1, %v156_v14 }
 0x2c3   :  { %v1973_v22 = vmax.f32 %v1698_v30, 0.0  ;;  %2881 = vst.msk [vmem:[#allocation8 + $0x128] sm:$0xff] %vm203_vm1, %v2572_v20  ;;  %3191 = vmatmul.msk.f32.gmra.mxu1 %vm1133_vm2, %v1063_v18  ;;  %v182_v20 = vld [vmem:[#allocation2 + $0x380] sm:$0xff] }
 0x2c4   :  { %3104 = vmatmul.msk.f32.gmra.mxu3 %vm203_vm1, %v181_v25 }
 0x2c5   :  { %3303 = vmatmul.msk.f32.gmra.mxu2 %vm1133_vm2, %v1973_v22 }
 0x2c6   :  { %v822_v23 = vpop.f32.mrf.mxu0 }
 0x2c7   :  { %v823_v35 = vadd.f32 %v3912_v10, %v822_v23  ;;  %v163_v23 = vld [vmem:[#allocation2 + $0x2e8] sm:$0xff] }
 0x2c8   :  { %v1700_v27 = vpop.f32.mrf.mxu1  ;;  %v2574_v28 = vpop.f32.mrf.mxu2 }
 0x2c9   :  { %v1064_v29 = vmax.f32 %v823_v35, 0.0  ;;  %v1701_v31 = vadd.f32 %v3971_v26, %v1700_v27  ;;  %v2575_v32 = vadd.f32 %v4087_v19, %v2574_v28  ;;  %3080 = vmatmul.msk.f32.gmra.mxu0 %vm203_vm1, %v157_v24 }
 0x2cb   :  { %v1974_v34 = vmax.f32 %v1701_v31, 0.0  ;;  %2882 = vst.msk [vmem:[#allocation8 + $0x130] sm:$0xff] %vm203_vm1, %v2575_v32  ;;  %3192 = vmatmul.msk.f32.gmra.mxu1 %vm1133_vm2, %v1064_v29  ;;  %v183_v32 = vld [vmem:[#allocation2 + $0x388] sm:$0xff] }
 0x2cc   :  { %3105 = vmatmul.msk.f32.gmra.mxu3 %vm203_vm1, %v182_v20 }
 0x2cd   :  { %3304 = vmatmul.msk.f32.gmra.mxu2 %vm1133_vm2, %v1974_v34 }
 0x2ce   :  { %v825_v36 = vpop.f32.mrf.mxu0 }
 0x2cf   :  { %v826_v38 = vadd.f32 %v3912_v10, %v825_v36  ;;  %v164_v36 = vld [vmem:[#allocation2 + $0x2f0] sm:$0xff] }
 0x2d0   :  { %v1703_v39 = vpop.f32.mrf.mxu1  ;;  %v2577_v40 = vpop.f32.mrf.mxu2 }
 0x2d1   :  { %v1065_v41 = vmax.f32 %v826_v38, 0.0  ;;  %v1704_v42 = vadd.f32 %v3971_v26, %v1703_v39  ;;  %v2578_v43 = vadd.f32 %v4087_v19, %v2577_v40  ;;  %3081 = vmatmul.msk.f32.gmra.mxu0 %vm203_vm1, %v158_v37  ;;  %v4151_v37 = vpop.f32.mrf.mxu3 }
 0x2d3   :  { %v1975_v45 = vmax.f32 %v1704_v42, 0.0  ;;  %2883 = vst.msk [vmem:[#allocation8 + $0x138] sm:$0xff] %vm203_vm1, %v2578_v43  ;;  %3193 = vmatmul.msk.f32.gmra.mxu1 %vm1133_vm2, %v1065_v41 }
 0x2d4   :  { %3106 = vmatmul.msk.f32.gmra.mxu3 %vm203_vm1, %v183_v32 }
 0x2d5   :  { %3305 = vmatmul.msk.f32.gmra.mxu2 %vm1133_vm2, %v1975_v45 }
 0x2d6   :  { %v828_v46 = vpop.f32.mrf.mxu0 }
 0x2d7   :  { %v829_v48 = vadd.f32 %v3912_v10, %v828_v46 }
 0x2d8   :  { %v1706_v49 = vpop.f32.mrf.mxu1  ;;  %v2580_v50 = vpop.f32.mrf.mxu2 }
 0x2d9   :  { %v1066_v51 = vmax.f32 %v829_v48, 0.0  ;;  %v1707_v52 = vadd.f32 %v3971_v26, %v1706_v49  ;;  %v2581_v53 = vadd.f32 %v4087_v19, %v2580_v50  ;;  %3082 = vmatmul.msk.f32.gmra.mxu0 %vm203_vm1, %v159_v47  ;;  %v165_v47 = vld [vmem:[#allocation2 + $0x2f8] sm:$0xff]  ;;  %v4161_v48 = vpop.f32.mrf.mxu3 }
 0x2db   :  { %v1976_v55 = vmax.f32 %v1707_v52, 0.0  ;;  %2884 = vst.msk [vmem:[#allocation8 + $0x140] sm:$0xff] %vm203_vm1, %v2581_v53  ;;  %3194 = vmatmul.msk.f32.gmra.mxu1 %vm1133_vm2, %v1066_v51 }
 0x2dc   :  { %3107 = vmatmul.msk.f32.gmra.mxu3 %vm203_vm1, %v184_v44 }
 0x2dd   :  { %3306 = vmatmul.msk.f32.gmra.mxu2 %vm1133_vm2, %v1976_v55  ;;  %v185_v55 = vld [vmem:[#allocation2 + $0x398] sm:$0xff] }
 0x2de   :  { %v831_v56 = vpop.f32.mrf.mxu0 }
 0x2df   :  { %v832_v58 = vadd.f32 %v3912_v10, %v831_v56 }
 0x2e0   :  { %v1709_v59 = vpop.f32.mrf.mxu1  ;;  %v2583_v60 = vpop.f32.mrf.mxu2 }
 0x2e1   :  { %v1067_v61 = vmax.f32 %v832_v58, 0.0  ;;  %v1710_v62 = vadd.f32 %v3971_v26, %v1709_v59  ;;  %v2584_v63 = vadd.f32 %v4087_v19, %v2583_v60  ;;  %3083 = vmatmul.msk.f32.gmra.mxu0 %vm203_vm1, %v160_v57  ;;  %v166_v58 = vld [vmem:[#allocation2 + $0x300] sm:$0xff] }
 0x2e3   :  { %v1977_v1 = vmax.f32 %v1710_v62, 0.0  ;;  %2885 = vst.msk [vmem:[#allocation8 + $0x148] sm:$0xff] %vm203_vm1, %v2584_v63  ;;  %3195 = vmatmul.msk.f32.gmra.mxu1 %vm1133_vm2, %v1067_v61 }
 0x2e4   :  { %3108 = vmatmul.msk.f32.gmra.mxu3 %vm203_vm1, %v185_v55 }
 0x2e5   :  { %3307 = vmatmul.msk.f32.gmra.mxu2 %vm1133_vm2, %v1977_v1 }
 0x2e6   :  { %v834_v2 = vpop.f32.mrf.mxu0  ;;  %v4171_v59 = vpop.f32.mrf.mxu3 }
 0x2e7   :  { %v835_v4 = vadd.f32 %v3912_v10, %v834_v2  ;;  %v186_v2 = vld [vmem:[#allocation2 + $0x3a0] sm:$0xff] }
 0x2e8   :  { %v1712_v5 = vpop.f32.mrf.mxu1  ;;  %v2586_v6 = vpop.f32.mrf.mxu2 }
 0x2e9   :  { %v1068_v7 = vmax.f32 %v835_v4, 0.0  ;;  %v1713_v8 = vadd.f32 %v3971_v26, %v1712_v5  ;;  %v2587_v9 = vadd.f32 %v4087_v19, %v2586_v6  ;;  %3084 = vmatmul.msk.f32.gmra.mxu0 %vm203_vm1, %v161_v3 }
 0x2eb   :  { %v1978_v11 = vmax.f32 %v1713_v8, 0.0  ;;  %2886 = vst.msk [vmem:[#allocation8 + $0x150] sm:$0xff] %vm203_vm1, %v2587_v9  ;;  %3196 = vmatmul.msk.f32.gmra.mxu1 %vm1133_vm2, %v1068_v7 }
 0x2ec   :  { %3109 = vmatmul.msk.f32.gmra.mxu3 %vm203_vm1, %v186_v2 }
 0x2ed   :  { %3308 = vmatmul.msk.f32.gmra.mxu2 %vm1133_vm2, %v1978_v11 }
 0x2ee   :  { %v837_v12 = vpop.f32.mrf.mxu0  ;;  %v4181_v5 = vpop.f32.mrf.mxu3 }
 0x2ef   :  { %v838_v14 = vadd.f32 %v3912_v10, %v837_v12  ;;  %v187_v12 = vld [vmem:[#allocation2 + $0x3a8] sm:$0xff] }
 0x2f0   :  { %v1715_v15 = vpop.f32.mrf.mxu1  ;;  %v2589_v16 = vpop.f32.mrf.mxu2 }
 0x2f1   :  { %v1069_v17 = vmax.f32 %v838_v14, 0.0  ;;  %v1716_v18 = vadd.f32 %v3971_v26, %v1715_v15  ;;  %v2590_v30 = vadd.f32 %v4087_v19, %v2589_v16  ;;  %3085 = vmatmul.msk.f32.gmra.mxu0 %vm203_vm1, %v162_v13 }
 0x2f3   :  { %v1979_v21 = vmax.f32 %v1716_v18, 0.0  ;;  %2887 = vst.msk [vmem:[#allocation8 + $0x158] sm:$0xff] %vm203_vm1, %v2590_v30  ;;  %3197 = vmatmul.msk.f32.gmra.mxu1 %vm1133_vm2, %v1069_v17 }
 0x2f4   :  { %3110 = vmatmul.msk.f32.gmra.mxu3 %vm203_vm1, %v187_v12 }
 0x2f5   :  { %3309 = vmatmul.msk.f32.gmra.mxu2 %vm1133_vm2, %v1979_v21 }
 0x2f6   :  { %v840_v22 = vpop.f32.mrf.mxu0  ;;  %v4190_v15 = vpop.f32.mrf.mxu3 }
 0x2f7   :  { %v841_v24 = vadd.f32 %v3912_v10, %v840_v22  ;;  %v188_v22 = vld [vmem:[#allocation2 + $0x3b0] sm:$0xff] }
 0x2f8   :  { %v1718_v35 = vpop.f32.mrf.mxu1  ;;  %v2592_v27 = vpop.f32.mrf.mxu2 }
 0x2f9   :  { %v1070_v28 = vmax.f32 %v841_v24, 0.0  ;;  %v1719_v29 = vadd.f32 %v3971_v26, %v1718_v35  ;;  %v2593_v31 = vadd.f32 %v4087_v19, %v2592_v27  ;;  %3086 = vmatmul.msk.f32.gmra.mxu0 %vm203_vm1, %v163_v23 }
 0x2fb   :  { %v1980_v33 = vmax.f32 %v1719_v29, 0.0  ;;  %2888 = vst.msk [vmem:[#allocation8 + $0x160] sm:$0xff] %vm203_vm1, %v2593_v31  ;;  %3198 = vmatmul.msk.f32.gmra.mxu1 %vm1133_vm2, %v1070_v28 }
 0x2fc   :  { %3111 = vmatmul.msk.f32.gmra.mxu3 %vm203_vm1, %v188_v22 }
 0x2fd   :  { %3310 = vmatmul.msk.f32.gmra.mxu2 %vm1133_vm2, %v1980_v33 }
 0x2fe   :  { %v843_v34 = vpop.f32.mrf.mxu0 }
 0x2ff   :  { %v844_v38 = vadd.f32 %v3912_v10, %v843_v34  ;;  %v4199_v35 = vpop.f32.mrf.mxu3  ;;  %v189_v34 = vld [vmem:[#allocation2 + $0x3b8] sm:$0xff] }
 0x300   :  { %v1721_v39 = vpop.f32.mrf.mxu1  ;;  %v2595_v40 = vpop.f32.mrf.mxu2 }
 0x301   :  { %v1071_v41 = vmax.f32 %v844_v38, 0.0  ;;  %v1722_v42 = vadd.f32 %v3971_v26, %v1721_v39  ;;  %v2596_v43 = vadd.f32 %v4087_v19, %v2595_v40  ;;  %3087 = vmatmul.msk.f32.gmra.mxu0 %vm203_vm1, %v164_v36 }
 0x303   :  { %v1981_v45 = vmax.f32 %v1722_v42, 0.0  ;;  %2889 = vst.msk [vmem:[#allocation8 + $0x168] sm:$0xff] %vm203_vm1, %v2596_v43  ;;  %3199 = vmatmul.msk.f32.gmra.mxu1 %vm1133_vm2, %v1071_v41 }
 0x304   :  { %3112 = vmatmul.msk.f32.gmra.mxu3 %vm203_vm1, %v189_v34 }
 0x305   :  { %3311 = vmatmul.msk.f32.gmra.mxu2 %vm1133_vm2, %v1981_v45 }
 0x306   :  { %v846_v46 = vpop.f32.mrf.mxu0 }
 0x307   :  { %v847_v49 = vadd.f32 %v3912_v10, %v846_v46  ;;  %v4208_v39 = vpop.f32.mrf.mxu3  ;;  %v190_v46 = vld [vmem:[#allocation2 + $0x3c0] sm:$0xff] }
 0x308   :  { %v1724_v50 = vpop.f32.mrf.mxu1  ;;  %v2598_v51 = vpop.f32.mrf.mxu2 }
 0x309   :  { %v1072_v52 = vmax.f32 %v847_v49, 0.0  ;;  %v1725_v53 = vadd.f32 %v3971_v26, %v1724_v50  ;;  %v2599_v54 = vadd.f32 %v4087_v19, %v2598_v51  ;;  %3088 = vmatmul.msk.f32.gmra.mxu0 %vm203_vm1, %v165_v47 }
 0x30b   :  { %v1982_v56 = vmax.f32 %v1725_v53, 0.0  ;;  %2890 = vst.msk [vmem:[#allocation8 + $0x170] sm:$0xff] %vm203_vm1, %v2599_v54  ;;  %3200 = vmatmul.msk.f32.gmra.mxu1 %vm1133_vm2, %v1072_v52 }
 0x30c   :  { %3113 = vmatmul.msk.f32.gmra.mxu3 %vm203_vm1, %v190_v46 }
 0x30d   :  { %3312 = vmatmul.msk.f32.gmra.mxu2 %vm1133_vm2, %v1982_v56 }
 0x30e   :  { %v849_v57 = vpop.f32.mrf.mxu0 }
 0x30f   :  { %v850_v60 = vadd.f32 %v3912_v10, %v849_v57  ;;  %v4217_v50 = vpop.f32.mrf.mxu3  ;;  %v191_v57 = vld [vmem:[#allocation2 + $0x3c8] sm:$0xff] }
 0x310   :  { %v1727_v61 = vpop.f32.mrf.mxu1  ;;  %v2601_v62 = vpop.f32.mrf.mxu2 }
 0x311   :  { %v1073_v63 = vmax.f32 %v850_v60, 0.0  ;;  %v1728_v0 = vadd.f32 %v3971_v26, %v1727_v61  ;;  %v2602_v1 = vadd.f32 %v4087_v19, %v2601_v62  ;;  %3089 = vmatmul.msk.f32.gmra.mxu0 %vm203_vm1, %v166_v58 }
 0x313   :  { %v1983_v3 = vmax.f32 %v1728_v0, 0.0  ;;  %2891 = vst.msk [vmem:[#allocation8 + $0x178] sm:$0xff] %vm203_vm1, %v2602_v1  ;;  %3201 = vmatmul.msk.f32.gmra.mxu1 %vm1133_vm2, %v1073_v63 }
 0x314   :  { %3114 = vmatmul.msk.f32.gmra.mxu3 %vm203_vm1, %v191_v57 }
 0x315   :  { %3313 = vmatmul.msk.f32.gmra.mxu2 %vm1133_vm2, %v1983_v3 }
 0x316   :  { %v852_v4 = vpop.f32.mrf.mxu0 }
 0x317   :  { %v853_v6 = vadd.f32 %v3912_v10, %v852_v4  ;;  %v4226_v61 = vpop.f32.mrf.mxu3  ;;  %v192_v4 = vld [vmem:[#allocation2 + $0x3d0] sm:$0xff] }
 0x318   :  { %v1730_v7 = vpop.f32.mrf.mxu1  ;;  %v2604_v8 = vpop.f32.mrf.mxu2 }
 0x319   :  { %v1074_v9 = vmax.f32 %v853_v6, 0.0  ;;  %v1731_v25 = vadd.f32 %v3971_v26, %v1730_v7  ;;  %v2605_v11 = vadd.f32 %v4087_v19, %v2604_v8 }
 0x31b   :  { %v1984_v13 = vmax.f32 %v1731_v25, 0.0  ;;  %2892 = vst.msk [vmem:[#allocation8 + $0x180] sm:$0xff] %vm203_vm1, %v2605_v11  ;;  %3202 = vmatmul.msk.f32.gmra.mxu1 %vm1133_vm2, %v1074_v9 }
 0x31c   :  { %3115 = vmatmul.msk.f32.gmra.mxu3 %vm203_vm1, %v192_v4 }
 0x31d   :  { %3314 = vmatmul.msk.f32.gmra.mxu2 %vm1133_vm2, %v1984_v13 }
 0x31e   :  { %v855_v14 = vpop.f32.mrf.mxu0 }
 0x31f   :  { %v856_v16 = vadd.f32 %v3912_v10, %v855_v14  ;;  %v4235_v8 = vpop.f32.mrf.mxu3 }
 0x320   :  { %v1733_v17 = vpop.f32.mrf.mxu1  ;;  %v2607_v18 = vpop.f32.mrf.mxu2 }
 0x321   :  { %v1075_v30 = vmax.f32 %v856_v16, 0.0  ;;  %v1734_v20 = vadd.f32 %v3971_v26, %v1733_v17  ;;  %v2608_v21 = vadd.f32 %v4087_v19, %v2607_v18  ;;  %v193_v16 = vld [vmem:[#allocation2 + $0x3d8] sm:$0xff] }
 0x323   :  { %v1985_v23 = vmax.f32 %v1734_v20, 0.0  ;;  %2893 = vst.msk [vmem:[#allocation8 + $0x188] sm:$0xff] %vm203_vm1, %v2608_v21  ;;  %3203 = vmatmul.msk.f32.gmra.mxu1 %vm1133_vm2, %v1075_v30 }
 0x324   :  { %3116 = vmatmul.msk.f32.gmra.mxu3 %vm203_vm1, %v193_v16 }
 0x325   :  { %3315 = vmatmul.msk.f32.gmra.mxu2 %vm1133_vm2, %v1985_v23 }
 0x326   :  { %v858_v24 = vpop.f32.mrf.mxu0 }
 0x327   :  { %v859_v27 = vadd.f32 %v3912_v10, %v858_v24  ;;  %v4246_v30 = vpop.f32.mrf.mxu3 }
 0x328   :  { %v1736_v28 = vpop.f32.mrf.mxu1  ;;  %v2610_v29 = vpop.f32.mrf.mxu2 }
 0x329   :  { %v1076_v31 = vmax.f32 %v859_v27, 0.0  ;;  %v1737_v32 = vadd.f32 %v3971_v26, %v1736_v28  ;;  %v2611_v33 = vadd.f32 %v4087_v19, %v2610_v29  ;;  %v194_v28 = vld [vmem:[#allocation2 + $0x3e0] sm:$0xff] }
 0x32b   :  { %v1986_v36 = vmax.f32 %v1737_v32, 0.0  ;;  %2894 = vst.msk [vmem:[#allocation8 + $0x190] sm:$0xff] %vm203_vm1, %v2611_v33  ;;  %3204 = vmatmul.msk.f32.gmra.mxu1 %vm1133_vm2, %v1076_v31 }
 0x32c   :  { %3117 = vmatmul.msk.f32.gmra.mxu3 %vm203_vm1, %v194_v28 }
 0x32d   :  { %3316 = vmatmul.msk.f32.gmra.mxu2 %vm1133_vm2, %v1986_v36 }
 0x32e   :  { %v861_v38 = vpop.f32.mrf.mxu0 }
 0x32f   :  { %v862_v40 = vadd.f32 %v3912_v10, %v861_v38  ;;  %v4255_v32 = vpop.f32.mrf.mxu3 }
 0x330   :  { %v1739_v41 = vpop.f32.mrf.mxu1  ;;  %v2613_v42 = vpop.f32.mrf.mxu2 }
 0x331   :  { %v1077_v43 = vmax.f32 %v862_v40, 0.0  ;;  %v1740_v44 = vadd.f32 %v3971_v26, %v1739_v41  ;;  %v2614_v45 = vadd.f32 %v4087_v19, %v2613_v42  ;;  %v195_v42 = vld [vmem:[#allocation2 + $0x3e8] sm:$0xff] }
 0x333   :  { %v1987_v47 = vmax.f32 %v1740_v44, 0.0  ;;  %2895 = vst.msk [vmem:[#allocation8 + $0x198] sm:$0xff] %vm203_vm1, %v2614_v45  ;;  %3205 = vmatmul.msk.f32.gmra.mxu1 %vm1133_vm2, %v1077_v43 }
 0x334   :  { %3118 = vmatmul.msk.f32.gmra.mxu3 %vm203_vm1, %v195_v42 }
 0x335   :  { %3317 = vmatmul.msk.f32.gmra.mxu2 %vm1133_vm2, %v1987_v47 }
 0x336   :  { %v864_v49 = vpop.f32.mrf.mxu0 }
 0x337   :  { %v865_v51 = vadd.f32 %v3912_v10, %v864_v49  ;;  %v4264_v45 = vpop.f32.mrf.mxu3 }
 0x338   :  { %v1742_v52 = vpop.f32.mrf.mxu1  ;;  %v2616_v53 = vpop.f32.mrf.mxu2 }
 0x339   :  { %v1078_v54 = vmax.f32 %v865_v51, 0.0  ;;  %v1743_v55 = vadd.f32 %v3971_v26, %v1742_v52  ;;  %v2617_v56 = vadd.f32 %v4087_v19, %v2616_v53 }
 0x33b   :  { %v1988_v58 = vmax.f32 %v1743_v55, 0.0  ;;  %2896 = vst.msk [vmem:[#allocation8 + $0x1a0] sm:$0xff] %vm203_vm1, %v2617_v56  ;;  %3206 = vmatmul.msk.f32.gmra.mxu1 %vm1133_vm2, %v1078_v54  ;;  %v196_v54 = vld [vmem:[#allocation2 + $0x3f0] sm:$0xff] }
 0x33c   :  { %3119 = vmatmul.msk.f32.gmra.mxu3 %vm203_vm1, %v196_v54 }
 0x33d   :  { %3318 = vmatmul.msk.f32.gmra.mxu2 %vm1133_vm2, %v1988_v58 }
 0x33e   :  { %v867_v60 = vpop.f32.mrf.mxu0 }
 0x33f   :  { %v868_v62 = vadd.f32 %v3912_v10, %v867_v60  ;;  %v4237_v10 = vld [vmem:[#allocation5] ss:$0 sm:$0xff]  ;;  %v4273_v57 = vpop.f32.mrf.mxu3 }
 0x340   :  { %v1745_v63 = vpop.f32.mrf.mxu1  ;;  %v2619_v0 = vpop.f32.mrf.mxu2 }
 0x341   :  { %v1079_v1 = vmax.f32 %v868_v62, 0.0  ;;  %v1746_v2 = vadd.f32 %v3971_v26, %v1745_v63  ;;  %v2620_v3 = vadd.f32 %v4087_v19, %v2619_v0 }
 0x343   :  { %v1989_v6 = vmax.f32 %v1746_v2, 0.0  ;;  %2897 = vst.msk [vmem:[#allocation8 + $0x1a8] sm:$0xff] %vm203_vm1, %v2620_v3  ;;  %3207 = vmatmul.msk.f32.gmra.mxu1 %vm1133_vm2, %v1079_v1  ;;  %v197_v2 = vld [vmem:[#allocation2 + $0x3f8] sm:$0xff] }
 0x344   :  { %3120 = vmatmul.msk.f32.gmra.mxu3 %vm203_vm1, %v197_v2  ;;  %v901_v2 = vadd.f32 %v4237_v10, %v4151_v37 }
 0x345   :  { %3319 = vmatmul.msk.f32.gmra.mxu2 %vm1133_vm2, %v1989_v6 }
 0x346   :  { %v870_v7 = vpop.f32.mrf.mxu0 }
 0x347   :  { %v871_v9 = vadd.f32 %v4237_v10, %v870_v7  ;;  %v4282_v6 = vpop.f32.mrf.mxu3 }
 0x348   :  { %v1748_v25 = vpop.f32.mrf.mxu1  ;;  %v2622_v11 = vpop.f32.mrf.mxu2 }
 0x349   :  { %v1080_v12 = vmax.f32 %v871_v9, 0.0  ;;  %v1749_v13 = vadd.f32 %v3971_v26, %v1748_v25  ;;  %v2623_v14 = vadd.f32 %v4087_v19, %v2622_v11 }
 0x34b   :  { %v1990_v17 = vmax.f32 %v1749_v13, 0.0  ;;  %2898 = vst.msk [vmem:[#allocation8 + $0x1b0] sm:$0xff] %vm203_vm1, %v2623_v14  ;;  %3208 = vmatmul.msk.f32.gmra.mxu1 %vm1133_vm2, %v1080_v12 }
 0x34d   :  { %3320 = vmatmul.msk.f32.gmra.mxu2 %vm1133_vm2, %v1990_v17 }
 0x34e   :  { %v873_v18 = vpop.f32.mrf.mxu0 }
 0x34f   :  { %v874_v20 = vadd.f32 %v4237_v10, %v873_v18  ;;  %v4290_v17 = vpop.f32.mrf.mxu3 }
 0x350   :  { %v1751_v21 = vpop.f32.mrf.mxu1  ;;  %v2625_v22 = vpop.f32.mrf.mxu2 }
 0x351   :  { %v1081_v23 = vmax.f32 %v874_v20, 0.0  ;;  %v1752_v24 = vadd.f32 %v3971_v26, %v1751_v21  ;;  %v2626_v27 = vadd.f32 %v4087_v19, %v2625_v22 }
 0x353   :  { %v1991_v29 = vmax.f32 %v1752_v24, 0.0  ;;  %2899 = vst.msk [vmem:[#allocation8 + $0x1b8] sm:$0xff] %vm203_vm1, %v2626_v27  ;;  %3209 = vmatmul.msk.f32.gmra.mxu1 %vm1133_vm2, %v1081_v23 }
 0x355   :  { %3321 = vmatmul.msk.f32.gmra.mxu2 %vm1133_vm2, %v1991_v29 }
 0x356   :  { %v876_v31 = vpop.f32.mrf.mxu0 }
 0x357   :  { %v877_v33 = vadd.f32 %v4237_v10, %v876_v31  ;;  %v4299_v31 = vpop.f32.mrf.mxu3 }
 0x358   :  { %v1754_v34 = vpop.f32.mrf.mxu1  ;;  %v2628_v36 = vpop.f32.mrf.mxu2 }
 0x359   :  { %v1082_v38 = vmax.f32 %v877_v33, 0.0  ;;  %v1755_v40 = vadd.f32 %v3971_v26, %v1754_v34  ;;  %v2629_v41 = vadd.f32 %v4087_v19, %v2628_v36 }
 0x35b   :  { %v1992_v43 = vmax.f32 %v1755_v40, 0.0  ;;  %2900 = vst.msk [vmem:[#allocation8 + $0x1c0] sm:$0xff] %vm203_vm1, %v2629_v41  ;;  %3210 = vmatmul.msk.f32.gmra.mxu1 %vm1133_vm2, %v1082_v38  ;;  %v4301_v38 = vld [vmem:[#allocation7] ss:$0 sm:$0xff] }
 0x35d   :  { %3322 = vmatmul.msk.f32.gmra.mxu2 %vm1133_vm2, %v1992_v43 }
 0x35e   :  { %v879_v44 = vpop.f32.mrf.mxu0 }
 0x35f   :  { %v880_v46 = vadd.f32 %v4237_v10, %v879_v44 }
 0x360   :  { %v1757_v47 = vpop.f32.mrf.mxu1  ;;  %v2631_v49 = vpop.f32.mrf.mxu2 }
 0x361   :  { %v1083_v51 = vmax.f32 %v880_v46, 0.0  ;;  %v1758_v52 = vadd.f32 %v3971_v26, %v1757_v47  ;;  %v2632_v53 = vadd.f32 %v4087_v19, %v2631_v49 }
 0x363   :  { %v1993_v55 = vmax.f32 %v1758_v52, 0.0  ;;  %2901 = vst.msk [vmem:[#allocation8 + $0x1c8] sm:$0xff] %vm203_vm1, %v2632_v53  ;;  %3211 = vmatmul.msk.f32.gmra.mxu1 %vm1133_vm2, %v1083_v51  ;;  %v4311_v52 = vpop.f32.mrf.mxu3 }
 0x365   :  { %3323 = vmatmul.msk.f32.gmra.mxu2 %vm1133_vm2, %v1993_v55 }
 0x366   :  { %v882_v56 = vpop.f32.mrf.mxu0 }
 0x367   :  { %v883_v58 = vadd.f32 %v4237_v10, %v882_v56 }
 0x368   :  { %v1760_v60 = vpop.f32.mrf.mxu1  ;;  %v2634_v62 = vpop.f32.mrf.mxu2 }
 0x369   :  { %v1084_v63 = vmax.f32 %v883_v58, 0.0  ;;  %v1761_v0 = vadd.f32 %v3971_v26, %v1760_v60  ;;  %v2635_v1 = vadd.f32 %v4087_v19, %v2634_v62 }
 0x36b   :  { %v1994_v3 = vmax.f32 %v1761_v0, 0.0  ;;  %2902 = vst.msk [vmem:[#allocation8 + $0x1d0] sm:$0xff] %vm203_vm1, %v2635_v1  ;;  %3212 = vmatmul.msk.f32.gmra.mxu1 %vm1133_vm2, %v1084_v63  ;;  %v4321_v1 = vpop.f32.mrf.mxu3 }
 0x36d   :  { %3324 = vmatmul.msk.f32.gmra.mxu2 %vm1133_vm2, %v1994_v3 }
 0x36e   :  { %v885_v4 = vpop.f32.mrf.mxu0 }
 0x36f   :  { %v886_v7 = vadd.f32 %v4237_v10, %v885_v4 }
 0x370   :  { %v1763_v9 = vpop.f32.mrf.mxu1  ;;  %v2637_v25 = vpop.f32.mrf.mxu2 }
 0x371   :  { %v1085_v11 = vmax.f32 %v886_v7, 0.0  ;;  %v1764_v12 = vadd.f32 %v3971_v26, %v1763_v9  ;;  %v2638_v13 = vadd.f32 %v4087_v19, %v2637_v25  ;;  %v1090_v7 = vmax.f32 %v901_v2, 0.0 }
 0x373   :  { %v1995_v14 = vmax.f32 %v1764_v12, 0.0  ;;  %2903 = vst.msk [vmem:[#allocation8 + $0x1d8] sm:$0xff] %vm203_vm1, %v2638_v13  ;;  %3213 = vmatmul.msk.f32.gmra.mxu1 %vm1133_vm2, %v1085_v11  ;;  %v904_v12 = vadd.f32 %v4237_v10, %v4161_v48  ;;  %v4333_v37 = vpop.f32.mrf.mxu3 }
 0x375   :  { %3325 = vmatmul.msk.f32.gmra.mxu2 %vm1133_vm2, %v1995_v14 }
 0x376   :  { %v888_v16 = vpop.f32.mrf.mxu0 }
 0x377   :  { %v889_v18 = vadd.f32 %v4237_v10, %v888_v16  ;;  %v1091_v16 = vmax.f32 %v904_v12, 0.0 }
 0x378   :  { %v1766_v20 = vpop.f32.mrf.mxu1  ;;  %v2640_v21 = vpop.f32.mrf.mxu2 }
 0x379   :  { %v1086_v22 = vmax.f32 %v889_v18, 0.0  ;;  %v1767_v23 = vadd.f32 %v3971_v26, %v1766_v20  ;;  %v2641_v24 = vadd.f32 %v4087_v19, %v2640_v21 }
 0x37b   :  { %v1996_v27 = vmax.f32 %v1767_v23, 0.0  ;;  %2904 = vst.msk [vmem:[#allocation8 + $0x1e0] sm:$0xff] %vm203_vm1, %v2641_v24  ;;  %3214 = vmatmul.msk.f32.gmra.mxu1 %vm1133_vm2, %v1086_v22  ;;  %v907_v22 = vadd.f32 %v4237_v10, %v4171_v59  ;;  %v4342_v48 = vpop.f32.mrf.mxu3 }
 0x37d   :  { %3326 = vmatmul.msk.f32.gmra.mxu2 %vm1133_vm2, %v1996_v27  ;;  %v1092_v27 = vmax.f32 %v907_v22, 0.0 }
 0x37e   :  { %v891_v28 = vpop.f32.mrf.mxu0 }
 0x37f   :  { %v892_v29 = vadd.f32 %v4237_v10, %v891_v28 }
 0x380   :  { %v1769_v33 = vpop.f32.mrf.mxu1  ;;  %v2643_v34 = vpop.f32.mrf.mxu2 }
 0x381   :  { %v1087_v36 = vmax.f32 %v892_v29, 0.0  ;;  %v1770_v26 = vadd.f32 %v4301_v38, %v1769_v33  ;;  %v2644_v40 = vadd.f32 %v4087_v19, %v2643_v34  ;;  %v910_v34 = vadd.f32 %v4237_v10, %v4181_v5 }
 0x383   :  { %v1997_v41 = vmax.f32 %v1770_v26, 0.0  ;;  %2905 = vst.msk [vmem:[#allocation8 + $0x1e8] sm:$0xff] %vm203_vm1, %v2644_v40  ;;  %3215 = vmatmul.msk.f32.gmra.mxu1 %vm1133_vm2, %v1087_v36  ;;  %v1093_v26 = vmax.f32 %v910_v34, 0.0 }
 0x385   :  { %3327 = vmatmul.msk.f32.gmra.mxu2 %vm1133_vm2, %v1997_v41 }
 0x386   :  { %v894_v42 = vpop.f32.mrf.mxu0 }
 0x387   :  { %v895_v43 = vadd.f32 %v4237_v10, %v894_v42  ;;  %v4353_v42 = vpop.f32.mrf.mxu3 }
 0x388   :  { %v1772_v44 = vpop.f32.mrf.mxu1  ;;  %v2646_v46 = vpop.f32.mrf.mxu2 }
 0x389   :  { %v1088_v47 = vmax.f32 %v895_v43, 0.0  ;;  %v1773_v49 = vadd.f32 %v4301_v38, %v1772_v44  ;;  %v2647_v51 = vadd.f32 %v4087_v19, %v2646_v46  ;;  %v913_v44 = vadd.f32 %v4237_v10, %v4190_v15 }
 0x38b   :  { %v1998_v53 = vmax.f32 %v1773_v49, 0.0  ;;  %2906 = vst.msk [vmem:[#allocation8 + $0x1f0] sm:$0xff] %vm203_vm1, %v2647_v51  ;;  %3216 = vmatmul.msk.f32.gmra.mxu1 %vm1133_vm2, %v1088_v47  ;;  %v1094_v47 = vmax.f32 %v913_v44, 0.0 }
 0x38d   :  { %3328 = vmatmul.msk.f32.gmra.mxu2 %vm1133_vm2, %v1998_v53 }
 0x38e   :  { %v897_v54 = vpop.f32.mrf.mxu0 }
 0x38f   :  { %v898_v55 = vadd.f32 %v4237_v10, %v897_v54  ;;  %v4364_v54 = vpop.f32.mrf.mxu3 }
 0x390   :  { %v1775_v56 = vpop.f32.mrf.mxu1  ;;  %v2649_v58 = vpop.f32.mrf.mxu2 }
 0x391   :  { %v1089_v60 = vmax.f32 %v898_v55, 0.0  ;;  %v1776_v62 = vadd.f32 %v4301_v38, %v1775_v56  ;;  %v2650_v63 = vadd.f32 %v4087_v19, %v2649_v58  ;;  %v916_v55 = vadd.f32 %v4237_v10, %v4199_v35 }
 0x393   :  { %v1999_v0 = vmax.f32 %v1776_v62, 0.0  ;;  %2907 = vst.msk [vmem:[#allocation8 + $0x1f8] sm:$0xff] %vm203_vm1, %v2650_v63  ;;  %3217 = vmatmul.msk.f32.vlgmr.msrb.gmra.mxu3 %vm1133_vm2, %v1089_v60  ;;  %v1095_v58 = vmax.f32 %v916_v55, 0.0 }
 0x395   :  { %3329 = vmatmul.msk.f32.gmra.mxu2 %vm1133_vm2, %v1999_v0  ;;  %v919_v0 = vadd.f32 %v4237_v10, %v4208_v39 }
 0x397   :  { %v4376_v35 = vpop.f32.mrf.mxu3 }
 0x398   :  { %v1778_v3 = vpop.f32.mrf.mxu1  ;;  %v2652_v4 = vpop.f32.mrf.mxu2 }
 0x399   :  { %v1779_v9 = vadd.f32 %v4301_v38, %v1778_v3  ;;  %v2653_v25 = vadd.f32 %v4087_v19, %v2652_v4  ;;  %v1096_v4 = vmax.f32 %v919_v0, 0.0 }
 0x39b   :  { %v2000_v11 = vmax.f32 %v1779_v9, 0.0  ;;  %2908 = vst.msk [vmem:[#allocation8 + $0x200] sm:$0xff] %vm203_vm1, %v2653_v25  ;;  %3218 = vmatmul.msk.f32.gmra.mxu3 %vm1133_vm2, %v1090_v7 }
 0x39d   :  { %3330 = vmatmul.msk.f32.gmra.mxu2 %vm1133_vm2, %v2000_v11  ;;  %v922_v11 = vadd.f32 %v4237_v10, %v4217_v50 }
 0x39f   :  { %v4385_v39 = vpop.f32.mrf.mxu3 }
 0x3a0   :  { %v1781_v13 = vpop.f32.mrf.mxu1  ;;  %v2655_v14 = vpop.f32.mrf.mxu2 }
 0x3a1   :  { %v1782_v18 = vadd.f32 %v4301_v38, %v1781_v13  ;;  %v2656_v20 = vadd.f32 %v4087_v19, %v2655_v14  ;;  %v1097_v14 = vmax.f32 %v922_v11, 0.0 }
 0x3a3   :  { %v2001_v21 = vmax.f32 %v1782_v18, 0.0  ;;  %2909 = vst.msk [vmem:[#allocation8 + $0x208] sm:$0xff] %vm203_vm1, %v2656_v20  ;;  %3219 = vmatmul.msk.f32.gmra.mxu3 %vm1133_vm2, %v1091_v16 }
 0x3a5   :  { %3331 = vmatmul.msk.f32.gmra.mxu2 %vm1133_vm2, %v2001_v21  ;;  %v925_v21 = vadd.f32 %v4237_v10, %v4226_v61 }
 0x3a8   :  { %v1784_v23 = vpop.f32.mrf.mxu1  ;;  %v2658_v24 = vpop.f32.mrf.mxu2 }
 0x3a9   :  { %v1785_v28 = vadd.f32 %v4301_v38, %v1784_v23  ;;  %v2659_v29 = vadd.f32 %v4087_v19, %v2658_v24  ;;  %v1098_v23 = vmax.f32 %v925_v21, 0.0 }
 0x3ab   :  { %v2002_v33 = vmax.f32 %v1785_v28, 0.0  ;;  %2910 = vst.msk [vmem:[#allocation8 + $0x210] sm:$0xff] %vm203_vm1, %v2659_v29  ;;  %3220 = vmatmul.msk.f32.gmra.mxu3 %vm1133_vm2, %v1092_v27  ;;  %v4396_v28 = vpop.f32.mrf.mxu3 }
 0x3ad   :  { %3332 = vmatmul.msk.f32.gmra.mxu2 %vm1133_vm2, %v2002_v33  ;;  %v928_v33 = vadd.f32 %v4237_v10, %v4235_v8 }
 0x3b0   :  { %v1787_v59 = vpop.f32.mrf.mxu1  ;;  %v2661_v36 = vpop.f32.mrf.mxu2 }
 0x3b1   :  { %v1788_v40 = vadd.f32 %v4301_v38, %v1787_v59  ;;  %v2662_v41 = vadd.f32 %v4087_v19, %v2661_v36  ;;  %v1099_v59 = vmax.f32 %v928_v33, 0.0 }
 0x3b3   :  { %v2003_v43 = vmax.f32 %v1788_v40, 0.0  ;;  %2911 = vst.msk [vmem:[#allocation8 + $0x218] sm:$0xff] %vm203_vm1, %v2662_v41  ;;  %3221 = vmatmul.msk.f32.gmra.mxu3 %vm1133_vm2, %v1093_v26  ;;  %v4407_v41 = vpop.f32.mrf.mxu3 }
 0x3b5   :  { %3333 = vmatmul.msk.f32.gmra.mxu2 %vm1133_vm2, %v2003_v43  ;;  %v931_v43 = vadd.f32 %v4237_v10, %v4246_v30 }
 0x3b8   :  { %v1790_v5 = vpop.f32.mrf.mxu1  ;;  %v2664_v46 = vpop.f32.mrf.mxu2 }
 0x3b9   :  { %v1791_v49 = vadd.f32 %v4301_v38, %v1790_v5  ;;  %v2665_v51 = vadd.f32 %v4087_v19, %v2664_v46  ;;  %v1100_v5 = vmax.f32 %v931_v43, 0.0 }
 0x3bb   :  { %v2004_v53 = vmax.f32 %v1791_v49, 0.0  ;;  %2912 = vst.msk [vmem:[#allocation8 + $0x220] sm:$0xff] %vm203_vm1, %v2665_v51  ;;  %3222 = vmatmul.msk.f32.gmra.mxu3 %vm1133_vm2, %v1094_v47  ;;  %v934_v51 = vadd.f32 %v4237_v10, %v4255_v32  ;;  %v4419_v30 = vpop.f32.mrf.mxu3 }
 0x3bd   :  { %3334 = vmatmul.msk.f32.gmra.mxu2 %vm1133_vm2, %v2004_v53 }
 0x3c0   :  { %v1793_v15 = vpop.f32.mrf.mxu1  ;;  %v2667_v56 = vpop.f32.mrf.mxu2 }
 0x3c1   :  { %v1794_v60 = vadd.f32 %v4301_v38, %v1793_v15  ;;  %v2668_v62 = vadd.f32 %v4087_v19, %v2667_v56  ;;  %v1101_v15 = vmax.f32 %v934_v51, 0.0 }
 0x3c3   :  { %v2005_v63 = vmax.f32 %v1794_v60, 0.0  ;;  %2913 = vst.msk [vmem:[#allocation8 + $0x228] sm:$0xff] %vm203_vm1, %v2668_v62  ;;  %3223 = vmatmul.msk.f32.gmra.mxu3 %vm1133_vm2, %v1095_v58  ;;  %v937_v62 = vadd.f32 %v4237_v10, %v4264_v45  ;;  %v4428_v32 = vpop.f32.mrf.mxu3 }
 0x3c5   :  { %3335 = vmatmul.msk.f32.gmra.mxu2 %vm1133_vm2, %v2005_v63 }
 0x3c8   :  { %v1796_v2 = vpop.f32.mrf.mxu1  ;;  %v2670_v3 = vpop.f32.mrf.mxu2 }
 0x3c9   :  { %v1797_v7 = vadd.f32 %v4301_v38, %v1796_v2  ;;  %v2671_v9 = vadd.f32 %v4087_v19, %v2670_v3  ;;  %v1102_v2 = vmax.f32 %v937_v62, 0.0 }
 0x3cb   :  { %v2006_v25 = vmax.f32 %v1797_v7, 0.0  ;;  %2914 = vst.msk [vmem:[#allocation8 + $0x230] sm:$0xff] %vm203_vm1, %v2671_v9  ;;  %3224 = vmatmul.msk.f32.gmra.mxu3 %vm1133_vm2, %v1096_v4  ;;  %v940_v9 = vadd.f32 %v4237_v10, %v4273_v57  ;;  %v943_v57 = vadd.f32 %v4237_v10, %v4282_v6 }
 0x3cd   :  { %3336 = vmatmul.msk.f32.gmra.mxu2 %vm1133_vm2, %v2006_v25  ;;  %v1103_v11 = vmax.f32 %v940_v9, 0.0  ;;  %v1104_v21 = vmax.f32 %v943_v57, 0.0 }
 0x3d0   :  { %v1799_v12 = vpop.f32.mrf.mxu1  ;;  %v2673_v13 = vpop.f32.mrf.mxu2 }
 0x3d1   :  { %v1800_v16 = vadd.f32 %v4301_v38, %v1799_v12  ;;  %v2674_v18 = vadd.f32 %v4087_v19, %v2673_v13  ;;  %v4441_v13 = vld [vmem:[%s4764_s6] ss:$0 sm:$0xff] }
 0x3d3   :  { %v2007_v20 = vmax.f32 %v1800_v16, 0.0  ;;  %2915 = vst.msk [vmem:[#allocation8 + $0x238] sm:$0xff] %vm203_vm1, %v2674_v18  ;;  %3225 = vmatmul.msk.f32.gmra.mxu3 %vm1133_vm2, %v1097_v14  ;;  %v4444_v14 = vpop.f32.mrf.mxu3 }
 0x3d5   :  { %3337 = vmatmul.msk.f32.gmra.mxu2 %vm1133_vm2, %v2007_v20 }
 0x3d8   :  { %v1802_v50 = vpop.f32.mrf.mxu1  ;;  %v2676_v22 = vpop.f32.mrf.mxu2 }
 0x3d9   :  { %v1803_v24 = vadd.f32 %v4301_v38, %v1802_v50  ;;  %v2677_v27 = vadd.f32 %v4087_v19, %v2676_v22 }
 0x3db   :  { %v2008_v29 = vmax.f32 %v1803_v24, 0.0  ;;  %2916 = vst.msk [vmem:[#allocation8 + $0x240] sm:$0xff] %vm203_vm1, %v2677_v27  ;;  %3226 = vmatmul.msk.f32.gmra.mxu3 %vm1133_vm2, %v1098_v23  ;;  %v4455_v24 = vpop.f32.mrf.mxu3  ;;  %v946_v27 = vadd.f32 %v4237_v10, %v4290_v17  ;;  %v952_v17 = vadd.f32 %v4237_v10, %v4311_v52  ;;  %v958_v52 = vadd.f32 %v4237_v10, %v4333_v37 }
 0x3dc   :  { %v964_v37 = vadd.f32 %v4237_v10, %v4353_v42  ;;  %v970_v42 = vadd.f32 %v4237_v10, %v4376_v35  ;;  %v976_v35 = vadd.f32 %v4237_v10, %v4396_v28  ;;  %v982_v28 = vadd.f32 %v4237_v10, %v4419_v30 }
 0x3dd   :  { %3338 = vmatmul.msk.f32.gmra.mxu2 %vm1133_vm2, %v2008_v29  ;;  %v1105_v29 = vmax.f32 %v946_v27, 0.0  ;;  %v988_v30 = vadd.f32 %v4237_v10, %v4444_v14 }
 0x3e0   :  { %v1805_v61 = vpop.f32.mrf.mxu1  ;;  %v2679_v34 = vpop.f32.mrf.mxu2 }
 0x3e1   :  { %v1806_v36 = vadd.f32 %v4301_v38, %v1805_v61  ;;  %v2680_v26 = vadd.f32 %v4087_v19, %v2679_v34  ;;  %v949_v61 = vadd.f32 %v4237_v10, %v4299_v31  ;;  %v955_v31 = vadd.f32 %v4237_v10, %v4321_v1 }
 0x3e2   :  { %v961_v1 = vadd.f32 %v4237_v10, %v4342_v48  ;;  %v967_v48 = vadd.f32 %v4237_v10, %v4364_v54  ;;  %v973_v54 = vadd.f32 %v4237_v10, %v4385_v39  ;;  %v979_v39 = vadd.f32 %v4237_v10, %v4407_v41 }
 0x3e3   :  { %v2009_v40 = vmax.f32 %v1806_v36, 0.0  ;;  %2917 = vst.msk [vmem:[#allocation8 + $0x248] sm:$0xff] %vm203_vm1, %v2680_v26  ;;  %3227 = vmatmul.msk.f32.gmra.mxu3 %vm1133_vm2, %v1099_v59  ;;  %v1106_v36 = vmax.f32 %v949_v61, 0.0  ;;  %v985_v41 = vadd.f32 %v4237_v10, %v4428_v32  ;;  %v991_v32 = vadd.f32 %v4237_v10, %v4455_v24 }
 0x3e4   :  { %v1112_v9 = vmax.f32 %v967_v48, 0.0 }
 0x3e5   :  { %3339 = vmatmul.msk.f32.gmra.mxu2 %vm1133_vm2, %v2009_v40 }
 0x3e8   :  { %v1808_v8 = vpop.f32.mrf.mxu1  ;;  %v2682_v44 = vpop.f32.mrf.mxu2 }
 0x3e9   :  { %v1809_v46 = vadd.f32 %v4301_v38, %v1808_v8  ;;  %v2683_v47 = vadd.f32 %v4087_v19, %v2682_v44  ;;  %v1107_v8 = vmax.f32 %v952_v17, 0.0 }
 0x3eb   :  { %v2010_v49 = vmax.f32 %v1809_v46, 0.0  ;;  %2918 = vst.msk [vmem:[#allocation8 + $0x250] sm:$0xff] %vm203_vm1, %v2683_v47  ;;  %3228 = vmatmul.msk.f32.gmra.mxu3 %vm1133_vm2, %v1100_v5  ;;  %v1108_v47 = vmax.f32 %v955_v31, 0.0 }
 0x3ed   :  { %3340 = vmatmul.msk.f32.gmra.mxu2 %vm1133_vm2, %v2010_v49 }
 0x3f0   :  { %v1811_v53 = vpop.f32.mrf.mxu1  ;;  %v2685_v55 = vpop.f32.mrf.mxu2 }
 0x3f1   :  { %v1812_v56 = vadd.f32 %v4301_v38, %v1811_v53  ;;  %v2686_v58 = vadd.f32 %v4087_v19, %v2685_v55  ;;  %v1109_v55 = vmax.f32 %v958_v52, 0.0 }
 0x3f3   :  { %v2011_v60 = vmax.f32 %v1812_v56, 0.0  ;;  %2919 = vst.msk [vmem:[#allocation8 + $0x258] sm:$0xff] %vm203_vm1, %v2686_v58  ;;  %3229 = vmatmul.msk.f32.gmra.mxu3 %vm1133_vm2, %v1101_v15 }
 0x3f5   :  { %3341 = vmatmul.msk.f32.gmra.mxu2 %vm1133_vm2, %v2011_v60  ;;  %v1110_v60 = vmax.f32 %v961_v1, 0.0 }
 0x3f8   :  { %v1814_v63 = vpop.f32.mrf.mxu1  ;;  %v2688_v0 = vpop.f32.mrf.mxu2 }
 0x3f9   :  { %v1815_v3 = vadd.f32 %v4301_v38, %v1814_v63  ;;  %v2689_v4 = vadd.f32 %v4087_v19, %v2688_v0 }
 0x3fb   :  { %v2012_v7 = vmax.f32 %v1815_v3, 0.0  ;;  %2920 = vst.msk [vmem:[#allocation8 + $0x260] sm:$0xff] %vm203_vm1, %v2689_v4  ;;  %3230 = vmatmul.msk.f32.gmra.mxu3 %vm1133_vm2, %v1102_v2  ;;  %v1111_v2 = vmax.f32 %v964_v37, 0.0 }
 0x3fd   :  { %3342 = vmatmul.msk.f32.gmra.mxu2 %vm1133_vm2, %v2012_v7 }
 0x400   :  { %v1817_v45 = vpop.f32.mrf.mxu1  ;;  %v2691_v25 = vpop.f32.mrf.mxu2 }
 0x401   :  { %v1818_v12 = vadd.f32 %v4301_v38, %v1817_v45  ;;  %v2692_v19 = vadd.f32 %v4441_v13, %v2691_v25 }
 0x403   :  { %v2013_v16 = vmax.f32 %v1818_v12, 0.0  ;;  %2921 = vst.msk [vmem:[#allocation8 + $0x268] sm:$0xff] %vm203_vm1, %v2692_v19  ;;  %3231 = vmatmul.msk.f32.gmra.mxu3 %vm1133_vm2, %v1103_v11  ;;  %v1113_v12 = vmax.f32 %v970_v42, 0.0 }
 0x405   :  { %3343 = vmatmul.msk.f32.gmra.mxu2 %vm1133_vm2, %v2013_v16 }
 0x408   :  { %v1820_v18 = vpop.f32.mrf.mxu1  ;;  %v2694_v20 = vpop.f32.mrf.mxu2 }
 0x409   :  { %v1821_v50 = vadd.f32 %v4301_v38, %v1820_v18  ;;  %v2695_v22 = vadd.f32 %v4441_v13, %v2694_v20  ;;  %v1114_v18 = vmax.f32 %v973_v54, 0.0 }
 0x40b   :  { %v2014_v23 = vmax.f32 %v1821_v50, 0.0  ;;  %2922 = vst.msk [vmem:[#allocation8 + $0x270] sm:$0xff] %vm203_vm1, %v2695_v22  ;;  %3232 = vmatmul.msk.f32.gmra.mxu3 %vm1133_vm2, %v1104_v21  ;;  %v1115_v22 = vmax.f32 %v976_v35, 0.0 }
 0x40d   :  { %3344 = vmatmul.msk.f32.gmra.mxu2 %vm1133_vm2, %v2014_v23 }
 0x410   :  { %v2697_v6 = vpop.f32.mrf.mxu2 }
 0x411   :  { %v2698_v33 = vadd.f32 %v4441_v13, %v2697_v6 }
 0x413   :  { %2923 = vst.msk [vmem:[#allocation8 + $0x278] sm:$0xff] %vm203_vm1, %v2698_v33  ;;  %3233 = vmatmul.msk.f32.gmra.mxu3 %vm1133_vm2, %v1105_v29  ;;  %v1116_v29 = vmax.f32 %v979_v39, 0.0 }
 0x416   :  { %v4465_v34 = vpop.f32.mrf.mxu3 }
 0x417   :  { %v1824_v14 = vadd.f32 %v4301_v38, %v4465_v34 }
 0x418   :  { %v2700_v59 = vpop.f32.mrf.mxu2 }
 0x419   :  { %v2701_v26 = vadd.f32 %v4441_v13, %v2700_v59 }
 0x41b   :  { %2924 = vst.msk [vmem:[#allocation8 + $0x280] sm:$0xff] %vm203_vm1, %v2701_v26  ;;  %3234 = vmatmul.msk.f32.gmra.mxu3 %vm1133_vm2, %v1106_v36  ;;  %v1117_v36 = vmax.f32 %v982_v28, 0.0 }
 0x41e   :  { %v4472_v40 = vpop.f32.mrf.mxu3 }
 0x41f   :  { %v1827_v10 = vadd.f32 %v4301_v38, %v4472_v40 }
 0x420   :  { %v2703_v43 = vpop.f32.mrf.mxu2 }
 0x421   :  { %v2704_v44 = vadd.f32 %v4441_v13, %v2703_v43  ;;  %v2016_v37 = vmax.f32 %v1827_v10, 0.0 }
 0x423   :  { %2925 = vst.msk [vmem:[#allocation8 + $0x288] sm:$0xff] %vm203_vm1, %v2704_v44  ;;  %3235 = vmatmul.msk.f32.gmra.mxu3 %vm1133_vm2, %v1107_v8  ;;  %v1118_v8 = vmax.f32 %v985_v41, 0.0 }
 0x426   :  { %v4479_v5 = vpop.f32.mrf.mxu3 }
 0x428   :  { %v2706_v46 = vpop.f32.mrf.mxu2 }
 0x429   :  { %v2707_v49 = vadd.f32 %v4441_v13, %v2706_v46 }
 0x42b   :  { %2926 = vst.msk [vmem:[#allocation8 + $0x290] sm:$0xff] %vm203_vm1, %v2707_v49  ;;  %3236 = vmatmul.msk.f32.gmra.mxu3 %vm1133_vm2, %v1108_v47  ;;  %v1119_v47 = vmax.f32 %v988_v30, 0.0 }
 0x42e   :  { %v4486_v51 = vpop.f32.mrf.mxu3 }
 0x430   :  { %v2709_v53 = vpop.f32.mrf.mxu2 }
 0x431   :  { %v2710_v15 = vadd.f32 %v4441_v13, %v2709_v53 }
 0x433   :  { %2927 = vst.msk [vmem:[#allocation8 + $0x298] sm:$0xff] %vm203_vm1, %v2710_v15  ;;  %3237 = vmatmul.msk.f32.gmra.mxu3 %vm1133_vm2, %v1109_v55  ;;  %v1120_v55 = vmax.f32 %v991_v32, 0.0 }
 0x436   :  { %v4493_v56 = vpop.f32.mrf.mxu3 }
 0x437   :  { %v1836_v40 = vadd.f32 %v4301_v38, %v4493_v56 }
 0x438   :  { %v2712_v58 = vpop.f32.mrf.mxu2 }
 0x439   :  { %v2713_v62 = vadd.f32 %v4441_v13, %v2712_v58 }
 0x43b   :  { %2928 = vst.msk [vmem:[#allocation8 + $0x2a0] sm:$0xff] %vm203_vm1, %v2713_v62  ;;  %3238 = vmatmul.msk.f32.gmra.mxu3 %vm1133_vm2, %v1110_v60  ;;  %v2015_v60 = vmax.f32 %v1824_v14, 0.0 }
 0x43e   :  { %v4500_v63 = vpop.f32.mrf.mxu3 }
 0x440   :  { %v2715_v0 = vpop.f32.mrf.mxu2 }
 0x441   :  { %v2716_v3 = vadd.f32 %v4441_v13, %v2715_v0  ;;  %v1830_v0 = vadd.f32 %v4301_v38, %v4479_v5  ;;  %v1839_v5 = vadd.f32 %v4301_v38, %v4500_v63 }
 0x443   :  { %2929 = vst.msk [vmem:[#allocation8 + $0x2a8] sm:$0xff] %vm203_vm1, %v2716_v3  ;;  %3239 = vmatmul.msk.f32.gmra.mxu3 %vm1133_vm2, %v1111_v2  ;;  %v2017_v2 = vmax.f32 %v1830_v0, 0.0  ;;  %v1833_v3 = vadd.f32 %v4301_v38, %v4486_v51 }
 0x446   :  { %v4507_v4 = vpop.f32.mrf.mxu3 }
 0x447   :  { %v1842_v51 = vadd.f32 %v4301_v38, %v4507_v4 }
 0x448   :  { %v2718_v7 = vpop.f32.mrf.mxu2 }
 0x449   :  { %v2719_v45 = vadd.f32 %v4441_v13, %v2718_v7  ;;  %v2018_v7 = vmax.f32 %v1833_v3, 0.0 }
 0x44b   :  { %2930 = vst.msk [vmem:[#allocation8 + $0x2b0] sm:$0xff] %vm203_vm1, %v2719_v45  ;;  %3240 = vmatmul.msk.f32.gmra.mxu3 %vm1133_vm2, %v1112_v9  ;;  %v2019_v45 = vmax.f32 %v1836_v40, 0.0 }
 0x44e   :  { %v4514_v25 = vpop.f32.mrf.mxu3 }
 0x44f   :  { %v1845_v56 = vadd.f32 %v4301_v38, %v4514_v25 }
 0x450   :  { %v2721_v11 = vpop.f32.mrf.mxu2 }
 0x451   :  { %v2722_v19 = vadd.f32 %v4441_v13, %v2721_v11  ;;  %v2020_v11 = vmax.f32 %v1839_v5, 0.0 }
 0x453   :  { %2931 = vst.msk [vmem:[#allocation8 + $0x2b8] sm:$0xff] %vm203_vm1, %v2722_v19  ;;  %3241 = vmatmul.msk.f32.gmra.mxu3 %vm1133_vm2, %v1113_v12  ;;  %v2021_v19 = vmax.f32 %v1842_v51, 0.0 }
 0x456   :  { %v4521_v16 = vpop.f32.mrf.mxu3 }
 0x457   :  { %v1848_v63 = vadd.f32 %v4301_v38, %v4521_v16 }
 0x458   :  { %v2724_v57 = vpop.f32.mrf.mxu2 }
 0x459   :  { %v2725_v20 = vadd.f32 %v4441_v13, %v2724_v57  ;;  %v2022_v57 = vmax.f32 %v1845_v56, 0.0 }
 0x45b   :  { %2932 = vst.msk [vmem:[#allocation8 + $0x2c0] sm:$0xff] %vm203_vm1, %v2725_v20  ;;  %3242 = vmatmul.msk.f32.gmra.mxu3 %vm1133_vm2, %v1114_v18  ;;  %v2023_v20 = vmax.f32 %v1848_v63, 0.0 }
 0x45e   :  { %v4528_v21 = vpop.f32.mrf.mxu3 }
 0x45f   :  { %v1851_v4 = vadd.f32 %v4301_v38, %v4528_v21 }
 0x460   :  { %v2727_v50 = vpop.f32.mrf.mxu2 }
 0x461   :  { %v2728_v23 = vadd.f32 %v4441_v13, %v2727_v50  ;;  %v2024_v50 = vmax.f32 %v1851_v4, 0.0 }
 0x463   :  { %2933 = vst.msk [vmem:[#allocation8 + $0x2c8] sm:$0xff] %vm203_vm1, %v2728_v23  ;;  %3243 = vmatmul.msk.f32.gmra.mxu3 %vm1133_vm2, %v1115_v22 }
 0x466   :  { %v4535_v27 = vpop.f32.mrf.mxu3 }
 0x467   :  { %v1854_v25 = vadd.f32 %v4301_v38, %v4535_v27 }
 0x468   :  { %v2730_v6 = vpop.f32.mrf.mxu2 }
 0x469   :  { %v2731_v33 = vadd.f32 %v4441_v13, %v2730_v6  ;;  %v2025_v23 = vmax.f32 %v1854_v25, 0.0 }
 0x46b   :  { %2934 = vst.msk [vmem:[#allocation8 + $0x2d0] sm:$0xff] %vm203_vm1, %v2731_v33  ;;  %3244 = vmatmul.msk.f32.gmra.mxu3 %vm1133_vm2, %v1116_v29 }
 0x46e   :  { %v4542_v61 = vpop.f32.mrf.mxu3 }
 0x46f   :  { %v1857_v16 = vadd.f32 %v4301_v38, %v4542_v61 }
 0x470   :  { %v2733_v59 = vpop.f32.mrf.mxu2 }
 0x471   :  { %v2734_v26 = vadd.f32 %v4441_v13, %v2733_v59  ;;  %v2026_v6 = vmax.f32 %v1857_v16, 0.0 }
 0x473   :  { %2935 = vst.msk [vmem:[#allocation8 + $0x2d8] sm:$0xff] %vm203_vm1, %v2734_v26  ;;  %3245 = vmatmul.msk.f32.gmra.mxu3 %vm1133_vm2, %v1117_v36 }
 0x476   :  { %v4549_v17 = vpop.f32.mrf.mxu3 }
 0x477   :  { %v1860_v21 = vadd.f32 %v4301_v38, %v4549_v17 }
 0x478   :  { %v2736_v43 = vpop.f32.mrf.mxu2 }
 0x479   :  { %v2737_v44 = vadd.f32 %v4441_v13, %v2736_v43  ;;  %v2027_v33 = vmax.f32 %v1860_v21, 0.0 }
 0x47b   :  { %2936 = vst.msk [vmem:[#allocation8 + $0x2e0] sm:$0xff] %vm203_vm1, %v2737_v44  ;;  %3246 = vmatmul.msk.f32.gmra.mxu3 %vm1133_vm2, %v1118_v8 }
 0x47e   :  { %v4556_v31 = vpop.f32.mrf.mxu3 }
 0x47f   :  { %v1863_v27 = vadd.f32 %v4301_v38, %v4556_v31 }
 0x480   :  { %v2739_v46 = vpop.f32.mrf.mxu2 }
 0x481   :  { %v2740_v49 = vadd.f32 %v4441_v13, %v2739_v46  ;;  %v2028_v59 = vmax.f32 %v1863_v27, 0.0 }
 0x483   :  { %2937 = vst.msk [vmem:[#allocation8 + $0x2e8] sm:$0xff] %vm203_vm1, %v2740_v49  ;;  %3247 = vmatmul.msk.f32.gmra.mxu3 %vm1133_vm2, %v1119_v47 }
 0x486   :  { %v4563_v52 = vpop.f32.mrf.mxu3 }
 0x487   :  { %v1866_v61 = vadd.f32 %v4301_v38, %v4563_v52 }
 0x488   :  { %v2742_v53 = vpop.f32.mrf.mxu2 }
 0x489   :  { %v2743_v15 = vadd.f32 %v4441_v13, %v2742_v53  ;;  %v2029_v26 = vmax.f32 %v1866_v61, 0.0 }
 0x48b   :  { %2938 = vst.msk [vmem:[#allocation8 + $0x2f0] sm:$0xff] %vm203_vm1, %v2743_v15  ;;  %3248 = vmatmul.msk.f32.gmra.mxu3 %vm1133_vm2, %v1120_v55 }
 0x48e   :  { %v1868_v1 = vpop.f32.mrf.mxu3 }
 0x48f   :  { %v1869_v41 = vadd.f32 %v4301_v38, %v1868_v1 }
 0x490   :  { %v2745_v58 = vpop.f32.mrf.mxu2 }
 0x491   :  { %v2746_v62 = vadd.f32 %v4441_v13, %v2745_v58  ;;  %v2030_v43 = vmax.f32 %v1869_v41, 0.0 }
 0x493   :  { %2939 = vst.msk [vmem:[#allocation8 + $0x2f8] sm:$0xff] %vm203_vm1, %v2746_v62  ;;  %3345 = vmatmul.msk.f32.vlgmr.msra.gmra.mxu3 %vm1133_vm2, %v2015_v60 }
 0x496   :  { %v1871_v24 = vpop.f32.mrf.mxu3 }
 0x497   :  { %v1872_v8 = vadd.f32 %v4301_v38, %v1871_v24 }
 0x499   :  { %v2031_v30 = vmax.f32 %v1872_v8, 0.0 }
 0x49b   :  { %3346 = vmatmul.msk.f32.gmra.mxu3 %vm1133_vm2, %v2016_v37 }
 0x49e   :  { %v1874_v34 = vpop.f32.mrf.mxu3 }
 0x49f   :  { %v1875_v31 = vadd.f32 %v4301_v38, %v1874_v34 }
 0x4a1   :  { %v2032_v49 = vmax.f32 %v1875_v31, 0.0 }
 0x4a3   :  { %3347 = vmatmul.msk.f32.gmra.mxu3 %vm1133_vm2, %v2017_v2 }
 0x4a6   :  { %v1877_v48 = vpop.f32.mrf.mxu3 }
 0x4a7   :  { %v1878_v32 = vadd.f32 %v4301_v38, %v1877_v48 }
 0x4a9   :  { %v2033_v55 = vmax.f32 %v1878_v32, 0.0 }
 0x4ab   :  { %3348 = vmatmul.msk.f32.gmra.mxu3 %vm1133_vm2, %v2018_v7 }
 0x4ae   :  { %v4584_v9 = vpop.f32.mrf.mxu3 }
 0x4af   :  { %v1881_v15 = vadd.f32 %v4301_v38, %v4584_v9 }
 0x4b1   :  { %v2034_v58 = vmax.f32 %v1881_v15, 0.0 }
 0x4b3   :  { %3349 = vmatmul.msk.f32.gmra.mxu3 %vm1133_vm2, %v2019_v45 }
 0x4b6   :  { %v4589_v42 = vpop.f32.mrf.mxu3 }
 0x4b7   :  { %v1884_v60 = vadd.f32 %v4301_v38, %v4589_v42 }
 0x4b9   :  { %v2035_v24 = vmax.f32 %v1884_v60, 0.0 }
 0x4bb   :  { %3350 = vmatmul.msk.f32.gmra.mxu3 %vm1133_vm2, %v2020_v11 }
 0x4be   :  { %v4594_v12 = vpop.f32.mrf.mxu3 }
 0x4bf   :  { %v1887_v37 = vadd.f32 %v4301_v38, %v4594_v12 }
 0x4c1   :  { %v2036_v2 = vmax.f32 %v1887_v37, 0.0 }
 0x4c3   :  { %3351 = vmatmul.msk.f32.gmra.mxu3 %vm1133_vm2, %v2021_v19 }
 0x4c6   :  { %v4599_v54 = vpop.f32.mrf.mxu3 }
 0x4c7   :  { %v1890_v3 = vadd.f32 %v4301_v38, %v4599_v54 }
 0x4c9   :  { %v2037_v40 = vmax.f32 %v1890_v3, 0.0 }
 0x4cb   :  { %3352 = vmatmul.msk.f32.gmra.mxu3 %vm1133_vm2, %v2022_v57 }
 0x4ce   :  { %v4604_v18 = vpop.f32.mrf.mxu3 }
 0x4cf   :  { %v1893_v9 = vadd.f32 %v4301_v38, %v4604_v18 }
 0x4d1   :  { %v2038_v42 = vmax.f32 %v1893_v9, 0.0 }
 0x4d3   :  { %3353 = vmatmul.msk.f32.gmra.mxu3 %vm1133_vm2, %v2023_v20 }
 0x4d6   :  { %v4609_v35 = vpop.f32.mrf.mxu3 }
 0x4d7   :  { %v1896_v11 = vadd.f32 %v4301_v38, %v4609_v35 }
 0x4d9   :  { %v2039_v19 = vmax.f32 %v1896_v11, 0.0 }
 0x4db   :  { %3354 = vmatmul.msk.f32.gmra.mxu3 %vm1133_vm2, %v2024_v50 }
 0x4de   :  { %v4614_v22 = vpop.f32.mrf.mxu3 }
 0x4df   :  { %v1899_v56 = vadd.f32 %v4301_v38, %v4614_v22 }
 0x4e1   :  { %v2040_v63 = vmax.f32 %v1899_v56, 0.0 }
 0x4e3   :  { %3355 = vmatmul.msk.f32.gmra.mxu3 %vm1133_vm2, %v2025_v23 }
 0x4e6   :  { %v4619_v39 = vpop.f32.mrf.mxu3 }
 0x4e7   :  { %v1902_v18 = vadd.f32 %v4301_v38, %v4619_v39 }
 0x4e9   :  { %v2041_v35 = vmax.f32 %v1902_v18, 0.0 }
 0x4eb   :  { %3356 = vmatmul.msk.f32.gmra.mxu3 %vm1133_vm2, %v2026_v6 }
 0x4ee   :  { %v4624_v29 = vpop.f32.mrf.mxu3 }
 0x4ef   :  { %v1905_v50 = vadd.f32 %v4301_v38, %v4624_v29 }
 0x4f1   :  { %v2042_v23 = vmax.f32 %v1905_v50, 0.0 }
 0x4f3   :  { %3357 = vmatmul.msk.f32.gmra.mxu3 %vm1133_vm2, %v2027_v33 }
 0x4f6   :  { %v4629_v28 = vpop.f32.mrf.mxu3 }
 0x4f7   :  { %v1908_v16 = vadd.f32 %v4301_v38, %v4629_v28 }
 0x4f9   :  { %v2043_v21 = vmax.f32 %v1908_v16, 0.0 }
 0x4fb   :  { %3358 = vmatmul.msk.f32.gmra.mxu3 %vm1133_vm2, %v2028_v59 }
 0x4fe   :  { %v4634_v36 = vpop.f32.mrf.mxu3 }
 0x4ff   :  { %v1911_v29 = vadd.f32 %v4301_v38, %v4634_v36 }
 0x501   :  { %v2044_v59 = vmax.f32 %v1911_v29, 0.0 }
 0x503   :  { %3359 = vmatmul.msk.f32.gmra.mxu3 %vm1133_vm2, %v2029_v26 }
 0x506   :  { %v4638_v17 = vpop.f32.mrf.mxu3 }
 0x507   :  { %v1914_v28 = vadd.f32 %v4301_v38, %v4638_v17 }
 0x509   :  { %v2045_v41 = vmax.f32 %v1914_v28, 0.0 }
 0x50b   :  { %3360 = vmatmul.msk.f32.gmra.mxu3 %vm1133_vm2, %v2030_v43 }
 0x50e   :  { %v4642_v44 = vpop.f32.mrf.mxu3 }
 0x50f   :  { %v1917_v36 = vadd.f32 %v4301_v38, %v4642_v44 }
 0x513   :  { %3361 = vmatmul.msk.f32.gmra.mxu3 %vm1133_vm2, %v2031_v30  ;;  %v2046_v30 = vmax.f32 %v1917_v36, 0.0 }
 0x516   :  { %v2748_v46 = vpop.f32.mrf.mxu3 }
 0x517   :  { %v2749_v47 = vadd.f32 %v4441_v13, %v2748_v46 }
 0x519   :  { %2940 = vst.msk [vmem:[#allocation8 + $0x300] sm:$0xff] %vm203_vm1, %v2749_v47 }
 0x51b   :  { %3362 = vmatmul.msk.f32.gmra.mxu3 %vm1133_vm2, %v2032_v49 }
 0x51e   :  { %v2751_v52 = vpop.f32.mrf.mxu3 }
 0x51f   :  { %v2752_v53 = vadd.f32 %v4441_v13, %v2751_v52 }
 0x521   :  { %2941 = vst.msk [vmem:[#allocation8 + $0x308] sm:$0xff] %vm203_vm1, %v2752_v53 }
 0x523   :  { %3363 = vmatmul.msk.f32.gmra.mxu3 %vm1133_vm2, %v2033_v55 }
 0x526   :  { %v2754_v14 = vpop.f32.mrf.mxu3 }
 0x527   :  { %v2755_v1 = vadd.f32 %v4441_v13, %v2754_v14 }
 0x529   :  { %2942 = vst.msk [vmem:[#allocation8 + $0x310] sm:$0xff] %vm203_vm1, %v2755_v1 }
 0x52b   :  { %3364 = vmatmul.msk.f32.gmra.mxu3 %vm1133_vm2, %v2034_v58 }
 0x52e   :  { %v2757_v62 = vpop.f32.mrf.mxu3 }
 0x52f   :  { %v2758_v10 = vadd.f32 %v4441_v13, %v2757_v62 }
 0x531   :  { %2943 = vst.msk [vmem:[#allocation8 + $0x318] sm:$0xff] %vm203_vm1, %v2758_v10 }
 0x533   :  { %3365 = vmatmul.msk.f32.gmra.mxu3 %vm1133_vm2, %v2035_v24 }
 0x536   :  { %v2760_v0 = vpop.f32.mrf.mxu3 }
 0x537   :  { %v2761_v34 = vadd.f32 %v4441_v13, %v2760_v0 }
 0x539   :  { %2944 = vst.msk [vmem:[#allocation8 + $0x320] sm:$0xff] %vm203_vm1, %v2761_v34 }
 0x53b   :  { %3366 = vmatmul.msk.f32.gmra.mxu3 %vm1133_vm2, %v2036_v2 }
 0x53e   :  { %v2763_v48 = vpop.f32.mrf.mxu3 }
 0x53f   :  { %v2764_v7 = vadd.f32 %v4441_v13, %v2763_v48 }
 0x541   :  { %2945 = vst.msk [vmem:[#allocation8 + $0x328] sm:$0xff] %vm203_vm1, %v2764_v7 }
 0x543   :  { %3367 = vmatmul.msk.f32.gmra.mxu3 %vm1133_vm2, %v2037_v40 }
 0x546   :  { %v2766_v45 = vpop.f32.mrf.mxu3 }
 0x547   :  { %v2767_v5 = vadd.f32 %v4441_v13, %v2766_v45 }
 0x549   :  { %2946 = vst.msk [vmem:[#allocation8 + $0x330] sm:$0xff] %vm203_vm1, %v2767_v5 }
 0x54b   :  { %3368 = vmatmul.msk.f32.gmra.mxu3 %vm1133_vm2, %v2038_v42 }
 0x54e   :  { %v2769_v51 = vpop.f32.mrf.mxu3 }
 0x54f   :  { %v2770_v12 = vadd.f32 %v4441_v13, %v2769_v51 }
 0x551   :  { %2947 = vst.msk [vmem:[#allocation8 + $0x338] sm:$0xff] %vm203_vm1, %v2770_v12 }
 0x553   :  { %3369 = vmatmul.msk.f32.gmra.mxu3 %vm1133_vm2, %v2039_v19 }
 0x556   :  { %v2772_v54 = vpop.f32.mrf.mxu3 }
 0x557   :  { %v2773_v57 = vadd.f32 %v4441_v13, %v2772_v54 }
 0x559   :  { %2948 = vst.msk [vmem:[#allocation8 + $0x340] sm:$0xff] %vm203_vm1, %v2773_v57 }
 0x55b   :  { %3370 = vmatmul.msk.f32.gmra.mxu3 %vm1133_vm2, %v2040_v63 }
 0x55e   :  { %v2775_v20 = vpop.f32.mrf.mxu3 }
 0x55f   :  { %v2776_v4 = vadd.f32 %v4441_v13, %v2775_v20 }
 0x561   :  { %2949 = vst.msk [vmem:[#allocation8 + $0x348] sm:$0xff] %vm203_vm1, %v2776_v4 }
 0x563   :  { %3371 = vmatmul.msk.f32.gmra.mxu3 %vm1133_vm2, %v2041_v35 }
 0x566   :  { %v2778_v25 = vpop.f32.mrf.mxu3 }
 0x567   :  { %v2779_v22 = vadd.f32 %v4441_v13, %v2778_v25 }
 0x569   :  { %2950 = vst.msk [vmem:[#allocation8 + $0x350] sm:$0xff] %vm203_vm1, %v2779_v22 }
 0x56b   :  { %3372 = vmatmul.msk.f32.gmra.mxu3 %vm1133_vm2, %v2042_v23 }
 0x56e   :  { %v2781_v39 = vpop.f32.mrf.mxu3 }
 0x56f   :  { %v2782_v6 = vadd.f32 %v4441_v13, %v2781_v39 }
 0x571   :  { %2951 = vst.msk [vmem:[#allocation8 + $0x358] sm:$0xff] %vm203_vm1, %v2782_v6 }
 0x573   :  { %3373 = vmatmul.msk.f32.gmra.mxu3 %vm1133_vm2, %v2043_v21 }
 0x576   :  { %v2784_v33 = vpop.f32.mrf.mxu3 }
 0x577   :  { %v2785_v27 = vadd.f32 %v4441_v13, %v2784_v33 }
 0x579   :  { %2952 = vst.msk [vmem:[#allocation8 + $0x360] sm:$0xff] %vm203_vm1, %v2785_v27 }
 0x57b   :  { %3374 = vmatmul.msk.f32.gmra.mxu3 %vm1133_vm2, %v2044_v59 }
 0x57e   :  { %v2787_v61 = vpop.f32.mrf.mxu3 }
 0x57f   :  { %v2788_v26 = vadd.f32 %v4441_v13, %v2787_v61 }
 0x581   :  { %2953 = vst.msk [vmem:[#allocation8 + $0x368] sm:$0xff] %vm203_vm1, %v2788_v26 }
 0x583   :  { %3375 = vmatmul.msk.f32.gmra.mxu3 %vm1133_vm2, %v2045_v41 }
 0x586   :  { %v2790_v43 = vpop.f32.mrf.mxu3 }
 0x587   :  { %v2791_v8 = vadd.f32 %v4441_v13, %v2790_v43 }
 0x589   :  { %2954 = vst.msk [vmem:[#allocation8 + $0x370] sm:$0xff] %vm203_vm1, %v2791_v8 }
 0x58b   :  { %3376 = vmatmul.msk.f32.gmra.mxu3 %vm1133_vm2, %v2046_v30 }
 0x58e   :  { %v2793_v17 = vpop.f32.mrf.mxu3 }
 0x58f   :  { %v2794_v31 = vadd.f32 %v4441_v13, %v2793_v17 }
 0x591   :  { %2955 = vst.msk [vmem:[#allocation8 + $0x378] sm:$0xff] %vm203_vm1, %v2794_v31 }
 0x596   :  { %v2796_v46 = vpop.f32.mrf.mxu3 }
 0x597   :  { %v2797_v47 = vadd.f32 %v4441_v13, %v2796_v46 }
 0x599   :  { %2956 = vst.msk [vmem:[#allocation8 + $0x380] sm:$0xff] %vm203_vm1, %v2797_v47 }
 0x59e   :  { %v2799_v49 = vpop.f32.mrf.mxu3 }
 0x59f   :  { %v2800_v38 = vadd.f32 %v4441_v13, %v2799_v49 }
 0x5a1   :  { %2957 = vst.msk [vmem:[#allocation8 + $0x388] sm:$0xff] %vm203_vm1, %v2800_v38 }
 0x5a6   :  { %v2802_v44 = vpop.f32.mrf.mxu3 }
 0x5a7   :  { %v2803_v32 = vadd.f32 %v4441_v13, %v2802_v44 }
 0x5a9   :  { %2958 = vst.msk [vmem:[#allocation8 + $0x390] sm:$0xff] %vm203_vm1, %v2803_v32 }
 0x5ae   :  { %v2805_v52 = vpop.f32.mrf.mxu3 }
 0x5af   :  { %v2806_v53 = vadd.f32 %v4441_v13, %v2805_v52 }
 0x5b1   :  { %2959 = vst.msk [vmem:[#allocation8 + $0x398] sm:$0xff] %vm203_vm1, %v2806_v53 }
 0x5b6   :  { %v2808_v55 = vpop.f32.mrf.mxu3 }
 0x5b7   :  { %v2809_v15 = vadd.f32 %v4441_v13, %v2808_v55 }
 0x5b9   :  { %2960 = vst.msk [vmem:[#allocation8 + $0x3a0] sm:$0xff] %vm203_vm1, %v2809_v15 }
 0x5be   :  { %v2811_v14 = vpop.f32.mrf.mxu3 }
 0x5bf   :  { %v2812_v1 = vadd.f32 %v4441_v13, %v2811_v14 }
 0x5c1   :  { %2961 = vst.msk [vmem:[#allocation8 + $0x3a8] sm:$0xff] %vm203_vm1, %v2812_v1 }
 0x5c6   :  { %v2814_v58 = vpop.f32.mrf.mxu3 }
 0x5c7   :  { %v2815_v60 = vadd.f32 %v4441_v13, %v2814_v58 }
 0x5c9   :  { %2962 = vst.msk [vmem:[#allocation8 + $0x3b0] sm:$0xff] %vm203_vm1, %v2815_v60 }
 0x5ce   :  { %v2817_v62 = vpop.f32.mrf.mxu3 }
 0x5cf   :  { %v2818_v10 = vadd.f32 %v4441_v13, %v2817_v62 }
 0x5d1   :  { %2963 = vst.msk [vmem:[#allocation8 + $0x3b8] sm:$0xff] %vm203_vm1, %v2818_v10 }
 0x5d6   :  { %v2820_v24 = vpop.f32.mrf.mxu3 }
 0x5d7   :  { %v2821_v37 = vadd.f32 %v4441_v13, %v2820_v24 }
 0x5d9   :  { %2964 = vst.msk [vmem:[#allocation8 + $0x3c0] sm:$0xff] %vm203_vm1, %v2821_v37 }
 0x5de   :  { %v2823_v0 = vpop.f32.mrf.mxu3 }
 0x5df   :  { %v2824_v34 = vadd.f32 %v4441_v13, %v2823_v0 }
 0x5e1   :  { %2965 = vst.msk [vmem:[#allocation8 + $0x3c8] sm:$0xff] %vm203_vm1, %v2824_v34 }
 0x5e6   :  { %v2826_v2 = vpop.f32.mrf.mxu3 }
 0x5e7   :  { %v2827_v3 = vadd.f32 %v4441_v13, %v2826_v2 }
 0x5e9   :  { %2966 = vst.msk [vmem:[#allocation8 + $0x3d0] sm:$0xff] %vm203_vm1, %v2827_v3 }
 0x5ee   :  { %v2829_v48 = vpop.f32.mrf.mxu3 }
 0x5ef   :  { %v2830_v7 = vadd.f32 %v4441_v13, %v2829_v48 }
 0x5f1   :  { %2967 = vst.msk [vmem:[#allocation8 + $0x3d8] sm:$0xff] %vm203_vm1, %v2830_v7 }
 0x5f6   :  { %v2832_v40 = vpop.f32.mrf.mxu3 }
 0x5f7   :  { %v2833_v9 = vadd.f32 %v4441_v13, %v2832_v40 }
 0x5f9   :  { %2968 = vst.msk [vmem:[#allocation8 + $0x3e0] sm:$0xff] %vm203_vm1, %v2833_v9 }
 0x5fe   :  { %v2835_v45 = vpop.f32.mrf.mxu3 }
 0x5ff   :  { %v2836_v5 = vadd.f32 %v4441_v13, %v2835_v45 }
 0x601   :  { %2969 = vst.msk [vmem:[#allocation8 + $0x3e8] sm:$0xff] %vm203_vm1, %v2836_v5 }
 0x606   :  { %v2838_v42 = vpop.f32.mrf.mxu3 }
 0x607   :  { %v2839_v11 = vadd.f32 %v4441_v13, %v2838_v42 }
 0x609   :  { %2970 = vst.msk [vmem:[#allocation8 + $0x3f0] sm:$0xff] %vm203_vm1, %v2839_v11 }
 0x60e   :  { %v2841_v51 = vpop.f32.mrf.mxu3 }
 0x60f   :  { %v2842_v12 = vadd.f32 %v4441_v13, %v2841_v51 }
 0x611   :  { %2971 = vst.msk [vmem:[#allocation8 + $0x3f8] sm:$0xff] %vm203_vm1, %v2842_v12 }
 0x612   :  { %2975 = vsyncadd [#allocation4], 16352  ;;  %s2978_s18 = sshll.u32 %s4765_s7, 4  ;;  %s3524_s19 = smov [#allocation8]   ;;  %s2979_s18 = int_to_ptr.hbm [resolvable:$true] %s2978_s18 }
 0x613   :  { %s2976_s20 = sshll.u32 %s3524_s19, 4  ;;  %s2977_s20 = int_to_ptr.vmem [resolvable:$true] %s2976_s20 }
 0x614   :  { %2984 = dma.vmem_to_hbm [thread:$0]  %s2977_s20, 32, %s2979_s18, [#allocation4], %s3521_s11, %s3521_s11, %s3522_s12  }
 0x615   :  { %3517 = dma.done.wait [#allocation4], 16384  }
 0x616   :  { %3518 = vsyncadd [#allocation4], 4294950912 }
 0x617   :  { %2989 = vsyncpa [#allocation3], 1 }
 0x618   :  { %2990 = vsyncpa [#allocation6], 1 }
 0x619   :  { %2991 = vsyncpa [#allocation4], 1 }

</bundles_post_ra>
